<compile_context>
chip_gen: v5e
topology: v5e:2x2
jax: 0.10.0
libtpu: 0.0.40
codegen_flags: <defaults>
</compile_context>

<pallas_src>
import functools

import jax
import jax.numpy as jnp
from jax import lax
from jax.experimental import pallas as pl
from jax.experimental.pallas import tpu as pltpu


# --------------------------------------------------------------------------
# Fused Pallas kernel: all output intervals x nt RK3 steps (OdeModel.ode_rk3)
# --------------------------------------------------------------------------
def _rk3_fused_kernel(h_ref, w_ref, b_ref, out_ref, h_sc, *, dt, nt, mm_dtype):
    t = pl.program_id(1)  # output-interval index ("arbitrary" axis)

    # At the first interval of each path tile, load the initial state into the
    # VMEM-resident carry.
    @pl.when(t == 0)
    def _():
        h_sc[...] = h_ref[...]

    w = w_ref[...].astype(mm_dtype)   # weights on the MXU in bf16
    b = b_ref[...]                    # bias stays f32

    # trace-time constants (dt folded into the RK3 coefficients)
    one_third = 1.0 / 3.0
    two_thirds = 2.0 / 3.0

    def rhs(h):
        # concrete forward(): tanh(h @ W + b)  — MXU matmul (f32 acc) + EUP tanh
        z = jnp.dot(h.astype(mm_dtype), w, preferred_element_type=jnp.float32) + b
        return jnp.tanh(z)

    def step(_, h0):
        r1 = rhs(h0)
        h1 = h0 + dt * r1
        r2 = rhs(h1)
        h2 = 0.75 * h0 + 0.25 * (h1 + dt * r2)
        r3 = rhs(h2)
        return one_third * h0 + two_thirds * (h2 + dt * r3)

    h = lax.fori_loop(0, nt, step, h_sc[...], unroll=True)
    h_sc[...] = h                       # carry to the next output interval
    out_ref[...] = h.astype(out_ref.dtype)


# --------------------------------------------------------------------------
# Host-side wrapper mirroring OdeModel.ode_run (single fused pallas_call)
# --------------------------------------------------------------------------
def ode_run(hinit, W, b, dt, T=1.0, Tout=1.0, tm=None, mm_dtype=jnp.bfloat16):
    Terr = abs(T - int(T / Tout) * Tout)
    assert Terr <= 1e-06, f"T={T} should be multiple of Tout={Tout}"
    Toerr = abs(Tout - int(Tout / dt) * dt)
    assert Toerr < 1e-06, f"Time step error: Tout={Tout}, dt={dt}"
    nOut = int(T / Tout) + 1
    nt = int(Tout / dt)

    nPath, nPC = hinit.shape

    # Lane-dense padding: last dim up to a multiple of 128 (zero pad => padded
    # state columns stay exactly 0 and never leak into real columns).
    nPC_pad = max(128, ((nPC + 127) // 128) * 128)
    h_pad = jnp.zeros((nPath, nPC_pad), jnp.float32).at[:, :nPC].set(
        hinit.astype(jnp.float32))
    W_pad = jnp.zeros((nPC_pad, nPC_pad), jnp.float32).at[:nPC, :nPC].set(
        W.astype(jnp.float32))
    b_pad = jnp.zeros((1, nPC_pad), jnp.float32).at[:, :nPC].set(
        b.astype(jnp.float32))

    # Tile choice: fill the MXU M dim, but keep >=2 path tiles so the
    # "parallel" axis can shard across both v7x TensorCores.
    if tm is None:
        tm = min(256, nPath)
        if nPath // tm < 2 and nPath >= 16:
            tm = nPath // 2
    tm = max(8, (tm // 8) * 8)
    assert nPath % tm == 0, f"nPath={nPath} must be a multiple of tm={tm}"
    n_tiles = nPath // tm

    kernel = functools.partial(_rk3_fused_kernel, dt=float(dt), nt=int(nt),
                               mm_dtype=mm_dtype)

    # NOTE: at large nPC, single-buffer W/b (constant index_map) and re-derive
    # tm against v7x's 64 MiB VMEM; at these sizes the defaults are fine.
    out = pl.pallas_call(
        kernel,
        out_shape=jax.ShapeDtypeStruct((nOut - 1, nPath, nPC_pad), jnp.float32),
        grid=(n_tiles, nOut - 1),
        in_specs=[
            pl.BlockSpec((tm, nPC_pad), lambda i, t: (i, 0)),        # h tile (resident over t)
            pl.BlockSpec((nPC_pad, nPC_pad), lambda i, t: (0, 0)),   # W (resident)
            pl.BlockSpec((1, nPC_pad), lambda i, t: (0, 0)),         # b (resident)
        ],
        out_specs=pl.BlockSpec((None, tm, nPC_pad), lambda i, t: (t, i, 0)),
        scratch_shapes=[pltpu.VMEM((tm, nPC_pad), jnp.float32)],     # carried state
        compiler_params=pltpu.CompilerParams(
            dimension_semantics=("parallel", "arbitrary")),
    )(h_pad, W_pad, b_pad)

    # (nOut-1, nPath, nPC_pad) -> (nPath, nOut, nPC); output slot 0 is hinit,
    # exactly as in OdeModel.ode_run.
    paths = jnp.concatenate(
        [h_pad[:, None, :], jnp.transpose(out, (1, 0, 2))], axis=1)
    return paths[:, :, :nPC]


# --------------------------------------------------------------------------
# Pure-JAX reference of the same RK3 scheme (for correctness check)
# --------------------------------------------------------------------------
def _rk3_ref(h_in, W, b, dt, nt, mm_dtype=jnp.bfloat16):
    Wc = W.astype(mm_dtype)

    def rhs(h):
        z = jnp.dot(h.astype(mm_dtype), Wc,
                    preferred_element_type=jnp.float32) + b
        return jnp.tanh(z)

    h = h_in
    for _ in range(nt):
        h0 = h
        r1 = rhs(h0)
        h1 = h0 + dt * r1
        r2 = rhs(h1)
        h2 = 0.75 * h0 + 0.25 * (h1 + dt * r2)
        r3 = rhs(h2)
        h = (1.0 / 3.0) * h0 + (2.0 / 3.0) * (h2 + dt * r3)
    return h


if __name__ == "__main__":
    nPath, nPC = 128, 32                 # 128 sample paths, 32 state variables
    T, Tout, dt = 1.0, 0.25, 0.0625      # exact binary fractions -> asserts pass

    key = jax.random.PRNGKey(0)
    k_h, k_w, k_b = jax.random.split(key, 3)

    # Deterministic synthetic parameters for the concrete RHS.
    W = jax.random.normal(k_w, (nPC, nPC), dtype=jnp.float32) * 0.1
    b = jax.random.normal(k_b, (1, nPC), dtype=jnp.float32) * 0.01

    # Initial states, uniform in [-1, 1] (stand-in for gen_sample_paths region).
    hinit = jax.random.uniform(k_h, (nPath, nPC), dtype=jnp.float32,
                               minval=-1.0, maxval=1.0)

    # Run the ODE solver: ONE fused Pallas kernel does all output intervals.
    paths = ode_run(hinit, W, b, dt, T=T, Tout=Tout)
    paths = jax.block_until_ready(paths)

    nOut = int(T / Tout) + 1
    nt = int(Tout / dt)
    assert paths.shape == (nPath, nOut, nPC)
    assert jnp.allclose(paths[:, 0, :], hinit)

    # Correctness check of every output interval against a pure-JAX reference
    # using the same bf16-matmul / f32-accumulate scheme (tolerance relaxed
    # accordingly vs a pure-f32 reference).
    ref = hinit
    for it in range(nOut - 1):
        ref = _rk3_ref(ref, W, b, dt, nt)
        assert jnp.allclose(paths[:, it + 1, :], ref, atol=2e-3, rtol=2e-3), (
            f"mismatch vs reference at output interval {it + 1}")

    print("KERNEL_OK")
</pallas_src>

<mosaic_0001>
module attributes {stable_mosaic.version = 11 : i64} {
  func.func @_rk3_fused_kernel(%arg0: i32, %arg1: i32, %arg2: memref<64x128xf32, #tpu.memory_space<vmem>>, %arg3: memref<128x128xf32, #tpu.memory_space<vmem>>, %arg4: memref<1x128xf32, #tpu.memory_space<vmem>>, %arg5: memref<1x64x128xf32, #tpu.memory_space<vmem>>, %arg6: memref<64x128xf32, #tpu.memory_space<vmem>>) attributes {dimension_semantics = [#tpu.dimension_semantics<parallel>, #tpu.dimension_semantics<arbitrary>], iteration_bounds = array<i64: 2, 4>, scalar_prefetch = 0 : i64, scratch_operands = 1 : i64, tpu.core_type = #tpu.core_type<tc>, window_params = [{transform_indices = @transform_0, window_bounds = array<i64: 64, 128>}, {pipeline_mode = #tpu.pipeline_mode<synchronous>, transform_indices = @transform_1, window_bounds = array<i64: 128, 128>}, {pipeline_mode = #tpu.pipeline_mode<synchronous>, transform_indices = @transform_2, window_bounds = array<i64: 1, 128>}, {transform_indices = @transform_3, window_bounds = array<i64: 1, 64, 128>}]} {
    %c0_i32 = arith.constant 0 : i32
    %0 = arith.cmpi eq, %arg1, %c0_i32 : i32
    %1 = arith.extui %0 : i1 to i32
    %c0_i32_0 = arith.constant 0 : i32
    %2 = arith.cmpi ne, %1, %c0_i32_0 : i32
    scf.if %2 {
      %c0_51 = arith.constant 0 : index
      %c0_52 = arith.constant 0 : index
      %147 = vector.load %arg2[%c0_51, %c0_52] : memref<64x128xf32, #tpu.memory_space<vmem>>, vector<64x128xf32>
      %c0_53 = arith.constant 0 : index
      %c0_54 = arith.constant 0 : index
      %148 = vector.load %arg6[%c0_53, %c0_54] : memref<64x128xf32, #tpu.memory_space<vmem>>, vector<64x128xf32>
      tpu.vector_store %arg6[%c0_53, %c0_54], %147 {strides = array<i32>} : memref<64x128xf32, #tpu.memory_space<vmem>>, vector<64x128xf32>,
    } else {
    }
    %c0 = arith.constant 0 : index
    %c0_1 = arith.constant 0 : index
    %3 = vector.load %arg3[%c0, %c0_1] : memref<128x128xf32, #tpu.memory_space<vmem>>, vector<128x128xf32>
    %4 = arith.truncf %3 : vector<128x128xf32> to vector<128x128xbf16>
    %c0_2 = arith.constant 0 : index
    %c0_3 = arith.constant 0 : index
    %5 = vector.load %arg4[%c0_2, %c0_3] : memref<1x128xf32, #tpu.memory_space<vmem>>, vector<1x128xf32>
    %c0_4 = arith.constant 0 : index
    %c0_5 = arith.constant 0 : index
    %6 = vector.load %arg6[%c0_4, %c0_5] : memref<64x128xf32, #tpu.memory_space<vmem>>, vector<64x128xf32>
    %c0_i32_6 = arith.constant 0 : i32
    %7 = arith.truncf %6 : vector<64x128xf32> to vector<64x128xbf16>
    %cst = arith.constant dense<0.000000e+00> : vector<64x128xf32>
    %8 = tpu.matmul %7, %4, %cst {dimension_numbers = #tpu.dot_dimension_numbers<[1], [0], [0], [1], [0, 0, 1, 1], [], []>} : vector<64x128xbf16>, vector<128x128xbf16>, vector<64x128xf32> -> vector<64x128xf32>
    %9 = vector.broadcast %5 : vector<1x128xf32> to vector<64x128xf32>
    %10 = arith.addf %8, %9 : vector<64x128xf32>
    %11 = math.tanh %10 : vector<64x128xf32>
    %cst_7 = arith.constant 6.250000e-02 : f32
    %12 = vector.broadcast %cst_7 : f32 to vector<64x128xf32>
    %13 = arith.mulf %12, %11 : vector<64x128xf32>
    %14 = arith.addf %6, %13 : vector<64x128xf32>
    %15 = arith.truncf %14 : vector<64x128xf32> to vector<64x128xbf16>
    %cst_8 = arith.constant dense<0.000000e+00> : vector<64x128xf32>
    %16 = tpu.matmul %15, %4, %cst_8 {dimension_numbers = #tpu.dot_dimension_numbers<[1], [0], [0], [1], [0, 0, 1, 1], [], []>} : vector<64x128xbf16>, vector<128x128xbf16>, vector<64x128xf32> -> vector<64x128xf32>
    %17 = vector.broadcast %5 : vector<1x128xf32> to vector<64x128xf32>
    %18 = arith.addf %16, %17 : vector<64x128xf32>
    %19 = math.tanh %18 : vector<64x128xf32>
    %cst_9 = arith.constant 7.500000e-01 : f32
    %20 = vector.broadcast %cst_9 : f32 to vector<64x128xf32>
    %21 = arith.mulf %20, %6 : vector<64x128xf32>
    %cst_10 = arith.constant 6.250000e-02 : f32
    %22 = vector.broadcast %cst_10 : f32 to vector<64x128xf32>
    %23 = arith.mulf %22, %19 : vector<64x128xf32>
    %24 = arith.addf %14, %23 : vector<64x128xf32>
    %cst_11 = arith.constant 2.500000e-01 : f32
    %25 = vector.broadcast %cst_11 : f32 to vector<64x128xf32>
    %26 = arith.mulf %25, %24 : vector<64x128xf32>
    %27 = arith.addf %21, %26 : vector<64x128xf32>
    %28 = arith.truncf %27 : vector<64x128xf32> to vector<64x128xbf16>
    %cst_12 = arith.constant dense<0.000000e+00> : vector<64x128xf32>
    %29 = tpu.matmul %28, %4, %cst_12 {dimension_numbers = #tpu.dot_dimension_numbers<[1], [0], [0], [1], [0, 0, 1, 1], [], []>} : vector<64x128xbf16>, vector<128x128xbf16>, vector<64x128xf32> -> vector<64x128xf32>
    %30 = vector.broadcast %5 : vector<1x128xf32> to vector<64x128xf32>
    %31 = arith.addf %29, %30 : vector<64x128xf32>
    %32 = math.tanh %31 : vector<64x128xf32>
    %cst_13 = arith.constant 0.333333343 : f32
    %33 = vector.broadcast %cst_13 : f32 to vector<64x128xf32>
    %34 = arith.mulf %33, %6 : vector<64x128xf32>
    %cst_14 = arith.constant 6.250000e-02 : f32
    %35 = vector.broadcast %cst_14 : f32 to vector<64x128xf32>
    %36 = arith.mulf %35, %32 : vector<64x128xf32>
    %37 = arith.addf %27, %36 : vector<64x128xf32>
    %cst_15 = arith.constant 0.666666686 : f32
    %38 = vector.broadcast %cst_15 : f32 to vector<64x128xf32>
    %39 = arith.mulf %38, %37 : vector<64x128xf32>
    %40 = arith.addf %34, %39 : vector<64x128xf32>
    %c1_i32 = arith.constant 1 : i32
    %41 = arith.truncf %40 : vector<64x128xf32> to vector<64x128xbf16>
    %cst_16 = arith.constant dense<0.000000e+00> : vector<64x128xf32>
    %42 = tpu.matmul %41, %4, %cst_16 {dimension_numbers = #tpu.dot_dimension_numbers<[1], [0], [0], [1], [0, 0, 1, 1], [], []>} : vector<64x128xbf16>, vector<128x128xbf16>, vector<64x128xf32> -> vector<64x128xf32>
    %43 = vector.broadcast %5 : vector<1x128xf32> to vector<64x128xf32>
    %44 = arith.addf %42, %43 : vector<64x128xf32>
    %45 = math.tanh %44 : vector<64x128xf32>
    %cst_17 = arith.constant 6.250000e-02 : f32
    %46 = vector.broadcast %cst_17 : f32 to vector<64x128xf32>
    %47 = arith.mulf %46, %45 : vector<64x128xf32>
    %48 = arith.addf %40, %47 : vector<64x128xf32>
    %49 = arith.truncf %48 : vector<64x128xf32> to vector<64x128xbf16>
    %cst_18 = arith.constant dense<0.000000e+00> : vector<64x128xf32>
    %50 = tpu.matmul %49, %4, %cst_18 {dimension_numbers = #tpu.dot_dimension_numbers<[1], [0], [0], [1], [0, 0, 1, 1], [], []>} : vector<64x128xbf16>, vector<128x128xbf16>, vector<64x128xf32> -> vector<64x128xf32>
    %51 = vector.broadcast %5 : vector<1x128xf32> to vector<64x128xf32>
    %52 = arith.addf %50, %51 : vector<64x128xf32>
    %53 = math.tanh %52 : vector<64x128xf32>
    %cst_19 = arith.constant 7.500000e-01 : f32
    %54 = vector.broadcast %cst_19 : f32 to vector<64x128xf32>
    %55 = arith.mulf %54, %40 : vector<64x128xf32>
    %cst_20 = arith.constant 6.250000e-02 : f32
    %56 = vector.broadcast %cst_20 : f32 to vector<64x128xf32>
    %57 = arith.mulf %56, %53 : vector<64x128xf32>
    %58 = arith.addf %48, %57 : vector<64x128xf32>
    %cst_21 = arith.constant 2.500000e-01 : f32
    %59 = vector.broadcast %cst_21 : f32 to vector<64x128xf32>
    %60 = arith.mulf %59, %58 : vector<64x128xf32>
    %61 = arith.addf %55, %60 : vector<64x128xf32>
    %62 = arith.truncf %61 : vector<64x128xf32> to vector<64x128xbf16>
    %cst_22 = arith.constant dense<0.000000e+00> : vector<64x128xf32>
    %63 = tpu.matmul %62, %4, %cst_22 {dimension_numbers = #tpu.dot_dimension_numbers<[1], [0], [0], [1], [0, 0, 1, 1], [], []>} : vector<64x128xbf16>, vector<128x128xbf16>, vector<64x128xf32> -> vector<64x128xf32>
    %64 = vector.broadcast %5 : vector<1x128xf32> to vector<64x128xf32>
    %65 = arith.addf %63, %64 : vector<64x128xf32>
    %66 = math.tanh %65 : vector<64x128xf32>
    %cst_23 = arith.constant 0.333333343 : f32
    %67 = vector.broadcast %cst_23 : f32 to vector<64x128xf32>
    %68 = arith.mulf %67, %40 : vector<64x128xf32>
    %cst_24 = arith.constant 6.250000e-02 : f32
    %69 = vector.broadcast %cst_24 : f32 to vector<64x128xf32>
    %70 = arith.mulf %69, %66 : vector<64x128xf32>
    %71 = arith.addf %61, %70 : vector<64x128xf32>
    %cst_25 = arith.constant 0.666666686 : f32
    %72 = vector.broadcast %cst_25 : f32 to vector<64x128xf32>
    %73 = arith.mulf %72, %71 : vector<64x128xf32>
    %74 = arith.addf %68, %73 : vector<64x128xf32>
    %c2_i32 = arith.constant 2 : i32
    %75 = arith.truncf %74 : vector<64x128xf32> to vector<64x128xbf16>
    %cst_26 = arith.constant dense<0.000000e+00> : vector<64x128xf32>
    %76 = tpu.matmul %75, %4, %cst_26 {dimension_numbers = #tpu.dot_dimension_numbers<[1], [0], [0], [1], [0, 0, 1, 1], [], []>} : vector<64x128xbf16>, vector<128x128xbf16>, vector<64x128xf32> -> vector<64x128xf32>
    %77 = vector.broadcast %5 : vector<1x128xf32> to vector<64x128xf32>
    %78 = arith.addf %76, %77 : vector<64x128xf32>
    %79 = math.tanh %78 : vector<64x128xf32>
    %cst_27 = arith.constant 6.250000e-02 : f32
    %80 = vector.broadcast %cst_27 : f32 to vector<64x128xf32>
    %81 = arith.mulf %80, %79 : vector<64x128xf32>
    %82 = arith.addf %74, %81 : vector<64x128xf32>
    %83 = arith.truncf %82 : vector<64x128xf32> to vector<64x128xbf16>
    %cst_28 = arith.constant dense<0.000000e+00> : vector<64x128xf32>
    %84 = tpu.matmul %83, %4, %cst_28 {dimension_numbers = #tpu.dot_dimension_numbers<[1], [0], [0], [1], [0, 0, 1, 1], [], []>} : vector<64x128xbf16>, vector<128x128xbf16>, vector<64x128xf32> -> vector<64x128xf32>
    %85 = vector.broadcast %5 : vector<1x128xf32> to vector<64x128xf32>
    %86 = arith.addf %84, %85 : vector<64x128xf32>
    %87 = math.tanh %86 : vector<64x128xf32>
    %cst_29 = arith.constant 7.500000e-01 : f32
    %88 = vector.broadcast %cst_29 : f32 to vector<64x128xf32>
    %89 = arith.mulf %88, %74 : vector<64x128xf32>
    %cst_30 = arith.constant 6.250000e-02 : f32
    %90 = vector.broadcast %cst_30 : f32 to vector<64x128xf32>
    %91 = arith.mulf %90, %87 : vector<64x128xf32>
    %92 = arith.addf %82, %91 : vector<64x128xf32>
    %cst_31 = arith.constant 2.500000e-01 : f32
    %93 = vector.broadcast %cst_31 : f32 to vector<64x128xf32>
    %94 = arith.mulf %93, %92 : vector<64x128xf32>
    %95 = arith.addf %89, %94 : vector<64x128xf32>
    %96 = arith.truncf %95 : vector<64x128xf32> to vector<64x128xbf16>
    %cst_32 = arith.constant dense<0.000000e+00> : vector<64x128xf32>
    %97 = tpu.matmul %96, %4, %cst_32 {dimension_numbers = #tpu.dot_dimension_numbers<[1], [0], [0], [1], [0, 0, 1, 1], [], []>} : vector<64x128xbf16>, vector<128x128xbf16>, vector<64x128xf32> -> vector<64x128xf32>
    %98 = vector.broadcast %5 : vector<1x128xf32> to vector<64x128xf32>
    %99 = arith.addf %97, %98 : vector<64x128xf32>
    %100 = math.tanh %99 : vector<64x128xf32>
    %cst_33 = arith.constant 0.333333343 : f32
    %101 = vector.broadcast %cst_33 : f32 to vector<64x128xf32>
    %102 = arith.mulf %101, %74 : vector<64x128xf32>
    %cst_34 = arith.constant 6.250000e-02 : f32
    %103 = vector.broadcast %cst_34 : f32 to vector<64x128xf32>
    %104 = arith.mulf %103, %100 : vector<64x128xf32>
    %105 = arith.addf %95, %104 : vector<64x128xf32>
    %cst_35 = arith.constant 0.666666686 : f32
    %106 = vector.broadcast %cst_35 : f32 to vector<64x128xf32>
    %107 = arith.mulf %106, %105 : vector<64x128xf32>
    %108 = arith.addf %102, %107 : vector<64x128xf32>
    %c3_i32 = arith.constant 3 : i32
    %109 = arith.truncf %108 : vector<64x128xf32> to vector<64x128xbf16>
    %cst_36 = arith.constant dense<0.000000e+00> : vector<64x128xf32>
    %110 = tpu.matmul %109, %4, %cst_36 {dimension_numbers = #tpu.dot_dimension_numbers<[1], [0], [0], [1], [0, 0, 1, 1], [], []>} : vector<64x128xbf16>, vector<128x128xbf16>, vector<64x128xf32> -> vector<64x128xf32>
    %111 = vector.broadcast %5 : vector<1x128xf32> to vector<64x128xf32>
    %112 = arith.addf %110, %111 : vector<64x128xf32>
    %113 = math.tanh %112 : vector<64x128xf32>
    %cst_37 = arith.constant 6.250000e-02 : f32
    %114 = vector.broadcast %cst_37 : f32 to vector<64x128xf32>
    %115 = arith.mulf %114, %113 : vector<64x128xf32>
    %116 = arith.addf %108, %115 : vector<64x128xf32>
    %117 = arith.truncf %116 : vector<64x128xf32> to vector<64x128xbf16>
    %cst_38 = arith.constant dense<0.000000e+00> : vector<64x128xf32>
    %118 = tpu.matmul %117, %4, %cst_38 {dimension_numbers = #tpu.dot_dimension_numbers<[1], [0], [0], [1], [0, 0, 1, 1], [], []>} : vector<64x128xbf16>, vector<128x128xbf16>, vector<64x128xf32> -> vector<64x128xf32>
    %119 = vector.broadcast %5 : vector<1x128xf32> to vector<64x128xf32>
    %120 = arith.addf %118, %119 : vector<64x128xf32>
    %121 = math.tanh %120 : vector<64x128xf32>
    %cst_39 = arith.constant 7.500000e-01 : f32
    %122 = vector.broadcast %cst_39 : f32 to vector<64x128xf32>
    %123 = arith.mulf %122, %108 : vector<64x128xf32>
    %cst_40 = arith.constant 6.250000e-02 : f32
    %124 = vector.broadcast %cst_40 : f32 to vector<64x128xf32>
    %125 = arith.mulf %124, %121 : vector<64x128xf32>
    %126 = arith.addf %116, %125 : vector<64x128xf32>
    %cst_41 = arith.constant 2.500000e-01 : f32
    %127 = vector.broadcast %cst_41 : f32 to vector<64x128xf32>
    %128 = arith.mulf %127, %126 : vector<64x128xf32>
    %129 = arith.addf %123, %128 : vector<64x128xf32>
    %130 = arith.truncf %129 : vector<64x128xf32> to vector<64x128xbf16>
    %cst_42 = arith.constant dense<0.000000e+00> : vector<64x128xf32>
    %131 = tpu.matmul %130, %4, %cst_42 {dimension_numbers = #tpu.dot_dimension_numbers<[1], [0], [0], [1], [0, 0, 1, 1], [], []>} : vector<64x128xbf16>, vector<128x128xbf16>, vector<64x128xf32> -> vector<64x128xf32>
    %132 = vector.broadcast %5 : vector<1x128xf32> to vector<64x128xf32>
    %133 = arith.addf %131, %132 : vector<64x128xf32>
    %134 = math.tanh %133 : vector<64x128xf32>
    %cst_43 = arith.constant 0.333333343 : f32
    %135 = vector.broadcast %cst_43 : f32 to vector<64x128xf32>
    %136 = arith.mulf %135, %108 : vector<64x128xf32>
    %cst_44 = arith.constant 6.250000e-02 : f32
    %137 = vector.broadcast %cst_44 : f32 to vector<64x128xf32>
    %138 = arith.mulf %137, %134 : vector<64x128xf32>
    %139 = arith.addf %129, %138 : vector<64x128xf32>
    %cst_45 = arith.constant 0.666666686 : f32
    %140 = vector.broadcast %cst_45 : f32 to vector<64x128xf32>
    %141 = arith.mulf %140, %139 : vector<64x128xf32>
    %142 = arith.addf %136, %141 : vector<64x128xf32>
    %c0_46 = arith.constant 0 : index
    %c0_47 = arith.constant 0 : index
    %143 = vector.load %arg6[%c0_46, %c0_47] : memref<64x128xf32, #tpu.memory_space<vmem>>, vector<64x128xf32>
    tpu.vector_store %arg6[%c0_46, %c0_47], %142 {strides = array<i32>} : memref<64x128xf32, #tpu.memory_space<vmem>>, vector<64x128xf32>,
    %c0_48 = arith.constant 0 : index
    %c0_49 = arith.constant 0 : index
    %c0_50 = arith.constant 0 : index
    %144 = vector.load %arg5[%c0_48, %c0_49, %c0_50] : memref<1x64x128xf32, #tpu.memory_space<vmem>>, vector<1x64x128xf32>
    %145 = vector.shape_cast %144 : vector<1x64x128xf32> to vector<64x128xf32>
    %146 = vector.shape_cast %142 : vector<64x128xf32> to vector<1x64x128xf32>
    tpu.vector_store %arg5[%c0_48, %c0_49, %c0_50], %146 {strides = array<i32>} : memref<1x64x128xf32, #tpu.memory_space<vmem>>, vector<1x64x128xf32>,
    return
  }
  func.func @transform_0(%arg0: i32, %arg1: i32) -> (i32, i32) {
    %c0_i32 = arith.constant 0 : i32
    %c0_i32_0 = arith.constant 0 : i32
    return %arg0, %c0_i32 : i32, i32
  }
  func.func @transform_1(%arg0: i32, %arg1: i32) -> (i32, i32) {
    %c0_i32 = arith.constant 0 : i32
    %c0_i32_0 = arith.constant 0 : i32
    %c0_i32_1 = arith.constant 0 : i32
    return %c0_i32, %c0_i32_0 : i32, i32
  }
  func.func @transform_2(%arg0: i32, %arg1: i32) -> (i32, i32) {
    %c0_i32 = arith.constant 0 : i32
    %c0_i32_0 = arith.constant 0 : i32
    %c0_i32_1 = arith.constant 0 : i32
    return %c0_i32, %c0_i32_0 : i32, i32
  }
  func.func @transform_3(%arg0: i32, %arg1: i32) -> (i32, i32, i32) {
    %c0_i32 = arith.constant 0 : i32
    %c0_i32_0 = arith.constant 0 : i32
    return %arg1, %arg0, %c0_i32 : i32, i32, i32
  }
}

</mosaic_0001>

<bundles_post_ra>
// kernel: tpu_custom_call.1
= control target key start
LH: loop header
LB: loop body
LE: loop exit
PB: predicated region body
PF: predicated region fallthrough
CT: control target
= control target key end

     0   :  { %s2670_s0 = inlined_call_operand.hbm [shape: f32[128,128], index: 0, kind: input, shape index: {}]   ;;  %s2671_s1 = inlined_call_operand.hbm [shape: f32[128,128], index: 1, kind: input, shape index: {}]   ;;  %s2672_s2 = inlined_call_operand.vmem [shape: f32[1,128], index: 2, kind: input, shape index: {}]   ;;  %s2673_s3 = inlined_call_operand.hbm [shape: f32[4,128,128], index: 3, kind: output, shape index: {}]  }
   0x1   :  { %2684 = sst [smem:[#allocation18_spill]] %s2671_s1 }
   0x2   :  { %2685 = sst [smem:[#allocation19_spill]] %s2673_s3 }
   0x3   :  { %8 = vsyncpa [#allocation4], 0 }
   0x4   :  { %10 = vsyncpa [#allocation4 + $0x1], 0 }
   0x5   :  { %11 = vsyncpa [#allocation7], 0 }
   0x6   :  { %12 = vsyncpa [#allocation5], 0 }
   0x7   :  { %14 = vsyncpa [#allocation5 + $0x1], 0  ;;  %s1831_s12 = smov 0   ;;  %s1833_s13 = smov 0  }
   0x8   :  { %s1835_s14 = smov 0   ;;  %s1837_s15 = smov 0  }
   0x9   :  { %s1839_s16 = smov 0   ;;  %s1841_s17 = smov 0  }
   0xa   :  { %s1843_s18 = smov 0   ;;  %s1845_s19 = smov 0  }
   0xb   :  { %s1847_s20 = smov 0   ;;  %s1849_s21 = smov 0  }
   0xc   :  { %s1851_s22 = smov 0  }
   0xd LB: > { %2686 = sst [smem:[#allocation12_spill]] %s1764_s12  ;;  %s1287_s23 = sadd.s32 4294967295, %s1804_s22   ;;  %s1804_s22 = sphi %s1851_s22, %s20_s22   ;;  %s1800_s21 = sphi %s1849_s21, %s2715_s21   ;;  %s1796_s20 = sphi %s1847_s20, %s2706_s20   ;;  %s1792_s19 = sphi %s1845_s19, %s2714_s19   ;;  %s1788_s18 = sphi %s1843_s18, %s2705_s18   ;;  %s1784_s17 = sphi %s1841_s17, %s2713_s17   ;;  %s1780_s16 = sphi %s1839_s16, %s2712_s16   ;;  %s1776_s15 = sphi %s1837_s15, %s2711_s15   ;;  %s1772_s14 = sphi %s1835_s14, %s2710_s14   ;;  %s1768_s13 = sphi %s1833_s13, %s2709_s13   ;;  %s1764_s12 = sphi %s1831_s12, %s2708_s12  }
   0xe   : > { %2687 = sst [smem:[#allocation13_spill]] %s1796_s20  ;;  %s1288_s24 = sadd.s32 4294967294, %s1804_s22  }
   0xf   : > { %p52_p0 = scmp.ne.s32.totalorder %s1780_s16, %s1776_s15  ;;  %p1887_p1 = scmp.eq.s32.totalorder %s1287_s23, 0 }
  0x10   : > { %p119_p2 = scmp.ne.s32.totalorder %s1772_s14, %s1768_s13  ;;  %p120_p3 = scmp.eq.s32.totalorder %s1287_s23, 7 }
  0x11   : > { %p1895_p4 = por %p1887_p1, %p52_p0  ;;  %p125_p5 = scmp.ne.s32.totalorder %s1768_s13, %s1764_s12 }
  0x12   : > { %p1901_p6 = por %p120_p3, %p119_p2  ;;  %p126_p7 = scmp.eq.s32.totalorder %s1288_s24, 7 }
  0x13   : > { %p1289_p8 = scmp.ge.s32.totalorder %s1804_s22, 1  ;;  %p133_p9 = scmp.lt.s32.totalorder %s1804_s22, 9 }
  0x14   : > { %s2690_s27 = scalar_select %p1901_p6, 1, 0 }
  0x15   : > { %p1907_p10 = por %p126_p7, %p125_p5  ;;  %p1911_p11 = pnand %p1289_p8, %p133_p9 }
  0x16   : > { %2691 = sst [smem:[#allocation14_spill]] %s2690_s27  ;;  %s1806_s6 = smov [#allocation6]  }
  0x17   : > { %s2692_s28 = scalar_select %p1907_p10, 1, 0 }
  0x18   : > { %s2695_s1 = sld [smem:[#allocation18_spill]]  ;;  %p1315_p12 = pneg %p1911_p11 }
  0x19   : > { %2693 = sst [smem:[#allocation15_spill]] %s2692_s28  ;;  %s146_s7 = sshll.u32 %s1806_s6, 4  ;;  %s147_s7 = int_to_ptr.vmem [resolvable:$true] %s146_s7 }
  0x1a   : > { %p1316_p13 = pnand %p1315_p12, %p1887_p1  ;;  %s2674_s8 = smov 128  }
  0x1b   : > { %s2675_s9 = smov 8   ;;  %s29_s10 = sadd.s32 1, %s1796_s20 }
  0x1c   : > { %s32_s11 = sadd.s32 1, %s1800_s21  ;;  %p30_p0 = scmp.ge.s32.totalorder %s29_s10, 4 }
  0x1d   : > { %s39_s15 = sadd.s32 1, %s1784_s17  ;;  %p46_p2 = scmp.ne.s32.totalorder %s1784_s17, %s1780_s16 }
  0x1e   : > { %s144_s5 = sshll.u32 %s2695_s1, 4  ;;  %p47_p3 = scmp.eq.s32.totalorder %s1804_s22, 0  ;;  %s145_s5 = int_to_ptr.hbm [resolvable:$true] %s144_s5 }
  0x1f   : > { %1318 = dma.hbm_to_vmem [thread:$0]  (!%p1316_p13), %s145_s5, 2048, %s147_s7, [#allocation7], %s2674_s8, %s2674_s8, %s2675_s9  }
  0x20   : > { %s2717_s10 = smov (%p30_p0, %s29_s10), 0  ;;  %s2719_s11 = smov (!%p30_p0, %s32_s11), %s1800_s21 }
  0x21   : > { %2696 = sst [smem:[#allocation16_spill]] %s2717_s10  ;;  %p1934_p5 = por %p47_p3, %p46_p2 }
  0x22   : > { %s104_s24 = ssub.s32 %s1796_s20, %s2717_s10  ;;  %p34_p7 = scmp.ge.s32.totalorder %s2719_s11, 2 }
  0x23   : > { %s109_s30 = sadd.s32 1, %s1772_s14  ;;  %p1328_p8 = scmp.lt.s32.totalorder %s1804_s22, 8 }
  0x24   : > { %s163_s4 = sand.u32 1, %s1784_s17   ;;  %s2721_s11 = smov (%p34_p7, %s2719_s11), 0 }
  0x25   : > { %2698 = sst [smem:[#allocation17_spill]] %s2721_s11  ;;  %s1292_s5 = sshll.u32 %s163_s4, 6 }
  0x26   : > { %s36_s6 = ssub.s32 %s1800_s21, %s2721_s11  ;;  %s1306_s8 = sshll.u32 %s1800_s21, 6 }
  0x27   : > { %p37_p9 = scmp.eq.s32.totalorder %s36_s6, 0  ;;  %s106_s7 = sor.u32 %s104_s24, %s36_s6 }
  0x28   : > { %p107_p12 = scmp.eq.s32.totalorder %s106_s7, 0  ;;  %s172_s28 = scalar_lea.hbm %s2670_s0, %s1306_s8 }
  0x29   : > { %s1949_s9 = scalar_select %p37_p9, %s1784_s17, %s39_s15  }
  0x2a   : > { %s1952_s1 = scalar_select %p107_p12, %s1772_s14, %s109_s30  }
  0x2b   : > { %s167_s12 = scalar_lea.vmem [#allocation3], %s1292_s5  ;;  %s173_s3 = sshll.u32 %s172_s28, 4  ;;  %s174_s3 = int_to_ptr.hbm [resolvable:$true] %s173_s3 }
  0x2c   : > { %s175_s27 = sshll.u32 %s167_s12, 4  ;;  %p1320_p13 = pnand %p1328_p8, %p1934_p5  ;;  %s176_s27 = int_to_ptr.vmem [resolvable:$true] %s175_s27 }
  0x2d   : > { %s164_s11 = scalar_lea.sflag [#allocation4], %s163_s4  ;;  %s2699_s24 = smov 8  }
  0x2e   : > { %s2700_s6 = smov 128   ;;  %187 = sbr.rel (%p1911_p11) target bundleno = 2011 (0x7db), region = 32 }
  0x2f   : > { %1322 = dma.hbm_to_vmem [thread:$0]  (!%p1320_p13), %s174_s3, 1024, %s176_s27, %s164_s11, %s2700_s6, %s2700_s6, %s2699_s24  }
  0x30   : > { %s189_s20 = sand.u32 (!%p1911_p11), 1, %s1780_s16  }
  0x31   : > { %s1296_s8 = sshll.u32 (!%p1911_p11), %s189_s20, 6  ;;  %s190_s10 = scalar_lea.sflag (!%p1911_p11), [#allocation4], %s189_s20 }
  0x32   : > { %s193_s12 = scalar_lea.vmem (!%p1911_p11), [#allocation3], %s1296_s8 }
  0x33   : > { %1751 = dma.done.wait (%p1895_p4), %s190_s10, 1024  }
  0x34   : > { %1753 = vsyncadd (%p1895_p4), %s190_s10, 4294966272 }
  0x35   : > { %1755 = dma.done.wait (%p1887_p1), [#allocation7], 2048  }
  0x36   : > { %1757 = vsyncadd (%p1887_p1), [#allocation7], 4294965248  ;;  %s219_s3 = sand.u32 1, %s1768_s13   ;;  %p1299_p11 = scmp.ne.s32.totalorder %s1788_s18, 0 }
  0x37   : > { %s1298_s27 = sshll.u32 %s219_s3, 6 }
  0x38   : > { %s1978_s28 = scalar_lea.vmem [#allocation8], %s1298_s27  ;;  %227 = sbr.rel (%p1299_p11) target bundleno = 70 (0x46), region = 44 }
  0x3d   : > { %v228_v0 = vld [vmem:[%s193_s12] sm:$0xff]  ;;  %v229_v1 = vld [vmem:[%s193_s12 + $0x8] sm:$0xff]  ;;  %v230_v2 = vld [vmem:[%s193_s12 + $0x10] sm:$0xff] }
  0x3e   : > { %236 = vst [vmem:[#allocation2 + $0x30] sm:$0xff] %v228_v0  ;;  %v231_v3 = vld [vmem:[%s193_s12 + $0x18] sm:$0xff]  ;;  %v232_v4 = vld [vmem:[%s193_s12 + $0x20] sm:$0xff]  ;;  %v233_v5 = vld [vmem:[%s193_s12 + $0x28] sm:$0xff] }
  0x3f   : > { %237 = vst [vmem:[#allocation2] sm:$0xff] %v229_v1  ;;  %v234_v6 = vld [vmem:[%s193_s12 + $0x30] sm:$0xff]  ;;  %v235_v7 = vld [vmem:[%s193_s12 + $0x38] sm:$0xff] }
  0x40   : > { %238 = vst [vmem:[#allocation2 + $0x18] sm:$0xff] %v230_v2 }
  0x41   : > { %239 = vst [vmem:[#allocation2 + $0x10] sm:$0xff] %v231_v3 }
  0x42   : > { %240 = vst [vmem:[#allocation2 + $0x8] sm:$0xff] %v232_v4 }
  0x43   : > { %241 = vst [vmem:[#allocation2 + $0x20] sm:$0xff] %v233_v5 }
  0x44   : > { %242 = vst [vmem:[#allocation2 + $0x28] sm:$0xff] %v234_v6 }
  0x45   : > { %243 = vst [vmem:[#allocation2 + $0x38] sm:$0xff] %v235_v7 }
  0x46 PF: > { %v258_v8 = vld [vmem:[#allocation6 + $0x70] sm:$0xff]  ;;  %v259_v9 = vld [vmem:[#allocation6 + $0x78] sm:$0xff]  ;;  %v256_v10 = vld [vmem:[#allocation6 + $0x60] sm:$0xff]  ;;  %s1301_s15 = sshll.u32 %s1792_s19, 3  ;;  %s1302_s23 = sshll.u32 %s1788_s18, 4 }
  0x47   : > { %v1981_v11 = vpack.c.bf16 %v259_v9, %v258_v8  ;;  %v257_v12 = vld [vmem:[#allocation6 + $0x68] sm:$0xff]  ;;  %v254_v14 = vld [vmem:[#allocation6 + $0x50] sm:$0xff]  ;;  %v255_v15 = vld [vmem:[#allocation6 + $0x58] sm:$0xff]  ;;  %s1184_s30 = sadd.s32 %s1302_s23, %s1301_s15  ;;  %s2701_s5 = sld [smem:[#allocation19_spill]] }
  0x48   : > { %v1984_v13 = vpack.c.bf16 %v257_v12, %v256_v10  ;;  %v1990_v16 = vpack.c.bf16 %v255_v15, %v254_v14  ;;  %v252_v17 = vld [vmem:[#allocation6 + $0x40] sm:$0xff]  ;;  %v253_v18 = vld [vmem:[#allocation6 + $0x48] sm:$0xff]  ;;  %v250_v20 = vld [vmem:[#allocation6 + $0x30] sm:$0xff]  ;;  %s1303_s4 = sshll.u32 %s1184_s30, 3  ;;  %s1187_s6 = sshll.u32 %s1978_s28, 4  ;;  %s1188_s6 = int_to_ptr.vmem [resolvable:$true] %s1187_s6 }
  0x49   : > { %284 = vmatpush.bf16.msra.mxu0 %v1981_v11  ;;  %341 = vmatpush.bf16.msra.mxu1 %v1981_v11  ;;  %v1996_v19 = vpack.c.bf16 %v253_v18, %v252_v17  ;;  %v251_v21 = vld [vmem:[#allocation6 + $0x38] sm:$0xff]  ;;  %v248_v23 = vld [vmem:[#allocation6 + $0x20] sm:$0xff]  ;;  %v249_v24 = vld [vmem:[#allocation6 + $0x28] sm:$0xff]  ;;  %s1173_s8 = scalar_lea.sflag [#allocation5], %s219_s3 }
  0x4a   : > { %422 = vmatpush.bf16.msra.mxu2 %v1981_v11  ;;  %503 = vmatpush.bf16.msra.mxu3 %v1981_v11  ;;  %v2002_v22 = vpack.c.bf16 %v251_v21, %v250_v20  ;;  %v2008_v25 = vpack.c.bf16 %v249_v24, %v248_v23  ;;  %v246_v26 = vld [vmem:[#allocation6 + $0x10] sm:$0xff]  ;;  %v247_v27 = vld [vmem:[#allocation6 + $0x18] sm:$0xff]  ;;  %v244_v29 = vld [vmem:[#allocation6] sm:$0xff] }
  0x4b   : > { %v2014_v28 = vpack.c.bf16 %v247_v27, %v246_v26  ;;  %v245_v30 = vld [vmem:[#allocation6 + $0x8] sm:$0xff]  ;;  %v2022_v32 = vld [vmem:[#allocation2 + $0x30] sm:$0xff]  ;;  %v2024_v33 = vld [vmem:[#allocation2] sm:$0xff] }
  0x4c   : > { %v2020_v31 = vpack.c.bf16 %v245_v30, %v244_v29  ;;  %v277_v34 = vpack.c.bf16 %v2024_v33, %v2022_v32  ;;  %v2046_v35 = vld [vmem:[#allocation2 + $0x18] sm:$0xff]  ;;  %v2048_v36 = vld [vmem:[#allocation2 + $0x10] sm:$0xff]  ;;  %v2068_v38 = vld [vmem:[#allocation2 + $0x8] sm:$0xff] }
  0x4d   : > { %285 = vmatpush.bf16.msra.mxu0 %v1984_v13  ;;  %342 = vmatpush.bf16.msra.mxu1 %v1984_v13  ;;  %v278_v37 = vpack.c.bf16 %v2048_v36, %v2046_v35  ;;  %v2070_v39 = vld [vmem:[#allocation2 + $0x20] sm:$0xff]  ;;  %v2082_v41 = vld [vmem:[#allocation2 + $0x28] sm:$0xff]  ;;  %v2084_v42 = vld [vmem:[#allocation2 + $0x38] sm:$0xff]  ;;  %s1186_s7 = scalar_lea.hbm %s2701_s5, %s1303_s4  ;;  %s1698_s26 = scalar_lea.hbm %s2701_s5, 512 }
  0x4e   : > { %423 = vmatpush.bf16.msra.mxu2 %v1984_v13  ;;  %504 = vmatpush.bf16.msra.mxu3 %v1984_v13  ;;  %v279_v40 = vpack.c.bf16 %v2070_v39, %v2068_v38  ;;  %v280_v43 = vpack.c.bf16 %v2084_v42, %v2082_v41  ;;  %v2096_v44 = vld [vmem:[%s2672_s2] ss:$0 sm:$0xff]  ;;  %s1189_s20 = sshll.u32 %s1186_s7, 4  ;;  %s1190_s20 = int_to_ptr.hbm [resolvable:$true] %s1189_s20 }
  0x4f   : > { %s1692_s10 = sshra.s32 %s1190_s20, 4  ;;  %s1693_s10 = int_to_ptr.hbm [resolvable:$true] %s1692_s10 }
  0x50   : > { %s1694_s12 = scalar_lea.hbm %s1693_s10, 64  ;;  %p1699_p2 = scmp.lt.s32.totalorder %s1693_s10, %s2701_s5 }
  0x51   : > { %286 = vmatpush.bf16.msra.mxu0 %v1990_v16  ;;  %343 = vmatpush.bf16.msra.mxu1 %v1990_v16  ;;  %p1695_p1 = scmp.ne.s32.totalorder %s1693_s10, %s1694_s12  ;;  %p1700_p3 = scmp.lt.s32.totalorder %s1698_s26, %s1694_s12 }
  0x52   : > { %424 = vmatpush.bf16.msra.mxu2 %v1990_v16  ;;  %505 = vmatpush.bf16.msra.mxu3 %v1990_v16 }
  0x53   : > { %p1696_p4 = pnand %p1695_p1, %p1901_p6  ;;  %p1701_p5 = por %p1700_p3, %p1699_p2 }
  0x55   : > { %287 = vmatpush.bf16.msra.mxu0 %v1996_v19  ;;  %344 = vmatpush.bf16.msra.mxu1 %v1996_v19  ;;  %p1697_p0 = pneg %p1696_p4 }
  0x56   : > { %425 = vmatpush.bf16.msra.mxu2 %v1996_v19  ;;  %506 = vmatpush.bf16.msra.mxu3 %v1996_v19 }
  0x57   : > { %p1702_p7 = pnand %p1701_p5, %p1697_p0 }
  0x59   : > { %288 = vmatpush.bf16.msra.mxu0 %v2002_v22  ;;  %345 = vmatpush.bf16.msra.mxu1 %v2002_v22 }
  0x5a   : > { %426 = vmatpush.bf16.msra.mxu2 %v2002_v22  ;;  %507 = vmatpush.bf16.msra.mxu3 %v2002_v22 }
  0x5d   : > { %289 = vmatpush.bf16.msra.mxu0 %v2008_v25  ;;  %346 = vmatpush.bf16.msra.mxu1 %v2008_v25 }
  0x5e   : > { %427 = vmatpush.bf16.msra.mxu2 %v2008_v25  ;;  %508 = vmatpush.bf16.msra.mxu3 %v2008_v25 }
  0x61   : > { %290 = vmatpush.bf16.msra.mxu0 %v2014_v28  ;;  %347 = vmatpush.bf16.msra.mxu1 %v2014_v28 }
  0x62   : > { %428 = vmatpush.bf16.msra.mxu2 %v2014_v28  ;;  %509 = vmatpush.bf16.msra.mxu3 %v2014_v28 }
  0x65   : > { %291 = vmatpush.bf16.msra.mxu0 %v2020_v31  ;;  %348 = vmatpush.bf16.msra.mxu1 %v2020_v31 }
  0x66   : > { %429 = vmatpush.bf16.msra.mxu2 %v2020_v31  ;;  %510 = vmatpush.bf16.msra.mxu3 %v2020_v31 }
  0x68   : > { %292 = vmatmul.bf16.vlgmr.msra.gmra.mxu0 %v277_v34 }
  0x69   : > { %560 = vmatpush.bf16.msrb.mxu0 %v1981_v11  ;;  %641 = vmatpush.bf16.msrb.mxu1 %v1981_v11 }
  0x6a   : > { %722 = vmatpush.bf16.msrb.mxu2 %v1981_v11  ;;  %779 = vmatpush.bf16.msrb.mxu3 %v1981_v11 }
  0x6d   : > { %561 = vmatpush.bf16.msrb.mxu0 %v1984_v13  ;;  %642 = vmatpush.bf16.msrb.mxu1 %v1984_v13 }
  0x6e   : > { %723 = vmatpush.bf16.msrb.mxu2 %v1984_v13  ;;  %780 = vmatpush.bf16.msrb.mxu3 %v1984_v13 }
  0x71   : > { %562 = vmatpush.bf16.msrb.mxu0 %v1990_v16  ;;  %643 = vmatpush.bf16.msrb.mxu1 %v1990_v16 }
  0x72   : > { %724 = vmatpush.bf16.msrb.mxu2 %v1990_v16  ;;  %781 = vmatpush.bf16.msrb.mxu3 %v1990_v16 }
  0x75   : > { %563 = vmatpush.bf16.msrb.mxu0 %v1996_v19  ;;  %644 = vmatpush.bf16.msrb.mxu1 %v1996_v19 }
  0x76   : > { %725 = vmatpush.bf16.msrb.mxu2 %v1996_v19  ;;  %782 = vmatpush.bf16.msrb.mxu3 %v1996_v19 }
  0x78   : > { %297 = vmatmul.bf16.gmra.mxu0 %v278_v37 }
  0x79   : > { %564 = vmatpush.bf16.msrb.mxu0 %v2002_v22  ;;  %645 = vmatpush.bf16.msrb.mxu1 %v2002_v22 }
  0x7a   : > { %726 = vmatpush.bf16.msrb.mxu2 %v2002_v22  ;;  %783 = vmatpush.bf16.msrb.mxu3 %v2002_v22 }
  0x7d   : > { %565 = vmatpush.bf16.msrb.mxu0 %v2008_v25  ;;  %646 = vmatpush.bf16.msrb.mxu1 %v2008_v25 }
  0x7e   : > { %727 = vmatpush.bf16.msrb.mxu2 %v2008_v25  ;;  %784 = vmatpush.bf16.msrb.mxu3 %v2008_v25 }
  0x81   : > { %566 = vmatpush.bf16.msrb.mxu0 %v2014_v28  ;;  %647 = vmatpush.bf16.msrb.mxu1 %v2014_v28 }
  0x82   : > { %728 = vmatpush.bf16.msrb.mxu2 %v2014_v28  ;;  %785 = vmatpush.bf16.msrb.mxu3 %v2014_v28 }
  0x85   : > { %567 = vmatpush.bf16.msrb.mxu0 %v2020_v31  ;;  %648 = vmatpush.bf16.msrb.mxu1 %v2020_v31 }
  0x86   : > { %729 = vmatpush.bf16.msrb.mxu2 %v2020_v31  ;;  %786 = vmatpush.bf16.msrb.mxu3 %v2020_v31 }
  0x88   : > { %302 = vmatmul.bf16.gmra.mxu0 %v279_v40 }
  0x89   : > { %860 = vmatpush.bf16.msra.mxu0 %v1981_v11 }
  0x8d   : > { %861 = vmatpush.bf16.msra.mxu0 %v1984_v13 }
  0x91   : > { %862 = vmatpush.bf16.msra.mxu0 %v1990_v16 }
  0x95   : > { %863 = vmatpush.bf16.msra.mxu0 %v1996_v19 }
  0x98   : > { %307 = vmatmul.bf16.gmra.mxu0 %v280_v43 }
  0x99   : > { %864 = vmatpush.bf16.msra.mxu0 %v2002_v22 }
  0x9d   : > { %865 = vmatpush.bf16.msra.mxu0 %v2008_v25 }
  0xa1   : > { %866 = vmatpush.bf16.msra.mxu0 %v2014_v28 }
  0xa5   : > { %867 = vmatpush.bf16.msra.mxu0 %v2020_v31 }
  0xe5   : > { %v293_v45 = vpop.f32.mrf.mxu0 }
  0xe6   : > { %v294_v46 = vadd.f32 %v2096_v44, %v293_v45 }
  0xe8   : > { %1425 = vtanh.f32 %v294_v46 }
  0xed   : > { %v295_v47 = vpop.f32.mrf.mxu0 }
  0xee   : > { %v296_v48 = vadd.f32 %v2096_v44, %v295_v47  ;;  %v1426_v49 = vpop.eup %1425 }
  0xef   : > { %v321_v50 = vmul.f32 0.0625, %v1426_v49 }
  0xf0   : > { %1427 = vtanh.f32 %v296_v48 }
  0xf1   : > { %v329_v55 = vadd.f32 %v321_v50, %v2022_v32 }
  0xf5   : > { %v298_v51 = vpop.f32.mrf.mxu0 }
  0xf6   : > { %v1428_v52 = vpop.eup %1427  ;;  %v299_v54 = vadd.f32 %v2096_v44, %v298_v51 }
  0xf7   : > { %v322_v53 = vmul.f32 0.0625, %v1428_v52 }
  0xf8   : > { %1429 = vtanh.f32 %v299_v54 }
  0xf9   : > { %v2103_v56 = vadd.f32 %v322_v53, %v2024_v33 }
  0xfb   : > { %v337_v57 = vpack.c.bf16 %v2103_v56, %v329_v55 }
  0xfd   : > { %v300_v58 = vpop.f32.mrf.mxu0  ;;  %349 = vmatmul.bf16.vlgmr.msra.gmra.mxu1 %v337_v57  ;;  %v378_v57 = vmul.f32 0.75, %v2022_v32 }
  0xfe   : > { %v301_v59 = vadd.f32 %v2096_v44, %v300_v58  ;;  %941 = vmatpush.bf16.msra.mxu1 %v1981_v11  ;;  %v1430_v60 = vpop.eup %1429  ;;  %v379_v58 = vmul.f32 0.75, %v2024_v33 }
  0xff   : > { %v323_v61 = vmul.f32 0.0625, %v1430_v60 }
 0x100   : > { %1431 = vtanh.f32 %v301_v59 }
 0x101   : > { %v2112_v2 = vadd.f32 %v323_v61, %v2046_v35 }
 0x102   : > { %942 = vmatpush.bf16.msra.mxu1 %v1984_v13 }
 0x105   : > { %v303_v62 = vpop.f32.mrf.mxu0 }
 0x106   : > { %v1432_v63 = vpop.eup %1431  ;;  %943 = vmatpush.bf16.msra.mxu1 %v1990_v16  ;;  %v304_v1 = vadd.f32 %v2096_v44, %v303_v62 }
 0x107   : > { %v324_v0 = vmul.f32 0.0625, %v1432_v63 }
 0x108   : > { %1433 = vtanh.f32 %v304_v1 }
 0x109   : > { %v2115_v3 = vadd.f32 %v324_v0, %v2048_v36 }
 0x10a   : > { %944 = vmatpush.bf16.msra.mxu1 %v1996_v19 }
 0x10b   : > { %v338_v4 = vpack.c.bf16 %v2115_v3, %v2112_v2 }
 0x10d   : > { %v305_v5 = vpop.f32.mrf.mxu0  ;;  %354 = vmatmul.bf16.gmra.mxu1 %v338_v4 }
 0x10e   : > { %v306_v6 = vadd.f32 %v2096_v44, %v305_v5  ;;  %945 = vmatpush.bf16.msra.mxu1 %v2002_v22  ;;  %v1434_v7 = vpop.eup %1433 }
 0x10f   : > { %v325_v8 = vmul.f32 0.0625, %v1434_v7 }
 0x110   : > { %1435 = vtanh.f32 %v306_v6 }
 0x111   : > { %v2126_v15 = vadd.f32 %v325_v8, %v2068_v38 }
 0x112   : > { %946 = vmatpush.bf16.msra.mxu1 %v2008_v25 }
 0x115   : > { %v308_v9 = vpop.f32.mrf.mxu0 }
 0x116   : > { %v1436_v10 = vpop.eup %1435  ;;  %947 = vmatpush.bf16.msra.mxu1 %v2014_v28  ;;  %v309_v14 = vadd.f32 %v2096_v44, %v308_v9 }
 0x117   : > { %v326_v12 = vmul.f32 0.0625, %v1436_v10  ;;  %v380_v10 = vmul.f32 0.75, %v2046_v35 }
 0x118   : > { %1437 = vtanh.f32 %v309_v14 }
 0x119   : > { %v2129_v17 = vadd.f32 %v326_v12, %v2070_v39  ;;  %v381_v12 = vmul.f32 0.75, %v2048_v36 }
 0x11a   : > { %948 = vmatpush.bf16.msra.mxu1 %v2020_v31 }
 0x11b   : > { %v339_v18 = vpack.c.bf16 %v2129_v17, %v2126_v15 }
 0x11d   : > { %v310_v20 = vpop.f32.mrf.mxu0  ;;  %359 = vmatmul.bf16.gmra.mxu1 %v339_v18 }
 0x11e   : > { %v311_v21 = vadd.f32 %v2096_v44, %v310_v20  ;;  %v1438_v23 = vpop.eup %1437 }
 0x11f   : > { %v327_v24 = vmul.f32 0.0625, %v1438_v23 }
 0x120   : > { %1439 = vtanh.f32 %v311_v21 }
 0x121   : > { %v2136_v29 = vadd.f32 %v327_v24, %v2082_v41 }
 0x126   : > { %v1440_v26 = vpop.eup %1439 }
 0x127   : > { %v328_v27 = vmul.f32 0.0625, %v1440_v26 }
 0x129   : > { %v2139_v30 = vadd.f32 %v328_v27, %v2084_v42 }
 0x12b   : > { %v340_v34 = vpack.c.bf16 %v2139_v30, %v2136_v29 }
 0x12d   : > { %364 = vmatmul.bf16.gmra.mxu1 %v340_v34 }
 0x17a   : > { %v350_v37 = vpop.f32.mrf.mxu1 }
 0x17b   : > { %v351_v40 = vadd.f32 %v2096_v44, %v350_v37 }
 0x17d   : > { %1441 = vtanh.f32 %v351_v40 }
 0x182   : > { %v352_v43 = vpop.f32.mrf.mxu1 }
 0x183   : > { %v1442_v45 = vpop.eup %1441  ;;  %v353_v46 = vadd.f32 %v2096_v44, %v352_v43 }
 0x184   : > { %v386_v47 = vmul.f32 0.0625, %v1442_v45 }
 0x185   : > { %1443 = vtanh.f32 %v353_v46  ;;  %v382_v46 = vmul.f32 0.75, %v2068_v38 }
 0x186   : > { %v394_v48 = vadd.f32 %v386_v47, %v329_v55  ;;  %v383_v47 = vmul.f32 0.75, %v2070_v39 }
 0x188   : > { %v402_v53 = vmul.f32 0.25, %v394_v48 }
 0x18a   : > { %v355_v49 = vpop.f32.mrf.mxu1  ;;  %v2149_v61 = vadd.f32 %v402_v53, %v378_v57 }
 0x18b   : > { %v1444_v50 = vpop.eup %1443  ;;  %v356_v51 = vadd.f32 %v2096_v44, %v355_v49 }
 0x18c   : > { %v387_v52 = vmul.f32 0.0625, %v1444_v50 }
 0x18d   : > { %1445 = vtanh.f32 %v356_v51 }
 0x18e   : > { %v395_v54 = vadd.f32 %v387_v52, %v2103_v56 }
 0x190   : > { %v403_v59 = vmul.f32 0.25, %v395_v54 }
 0x192   : > { %v357_v60 = vpop.f32.mrf.mxu1  ;;  %v2151_v62 = vadd.f32 %v403_v59, %v379_v58 }
 0x193   : > { %v1446_v55 = vpop.eup %1445  ;;  %v358_v63 = vadd.f32 %v2096_v44, %v357_v60 }
 0x194   : > { %v418_v0 = vpack.c.bf16 %v2151_v62, %v2149_v61  ;;  %v388_v1 = vmul.f32 0.0625, %v1446_v55  ;;  %v384_v55 = vmul.f32 0.75, %v2082_v41 }
 0x195   : > { %1447 = vtanh.f32 %v358_v63  ;;  %v385_v63 = vmul.f32 0.75, %v2084_v42 }
 0x196   : > { %430 = vmatmul.bf16.vlgmr.msra.gmra.mxu2 %v418_v0  ;;  %v396_v56 = vadd.f32 %v388_v1, %v2112_v2 }
 0x197   : > { %998 = vmatpush.bf16.msra.mxu2 %v1981_v11 }
 0x198   : > { %v404_v8 = vmul.f32 0.25, %v396_v56 }
 0x19a   : > { %v360_v4 = vpop.f32.mrf.mxu1  ;;  %v2164_v2 = vadd.f32 %v404_v8, %v380_v10 }
 0x19b   : > { %v1448_v5 = vpop.eup %1447  ;;  %v361_v6 = vadd.f32 %v2096_v44, %v360_v4  ;;  %999 = vmatpush.bf16.msra.mxu2 %v1984_v13 }
 0x19c   : > { %v389_v7 = vmul.f32 0.0625, %v1448_v5 }
 0x19d   : > { %1449 = vtanh.f32 %v361_v6 }
 0x19e   : > { %v397_v9 = vadd.f32 %v389_v7, %v2115_v3 }
 0x19f   : > { %1000 = vmatpush.bf16.msra.mxu2 %v1990_v16 }
 0x1a0   : > { %v405_v14 = vmul.f32 0.25, %v397_v9 }
 0x1a2   : > { %v362_v18 = vpop.f32.mrf.mxu1  ;;  %v2166_v20 = vadd.f32 %v405_v14, %v381_v12 }
 0x1a3   : > { %v1450_v21 = vpop.eup %1449  ;;  %v363_v23 = vadd.f32 %v2096_v44, %v362_v18  ;;  %1001 = vmatpush.bf16.msra.mxu2 %v1996_v19 }
 0x1a4   : > { %v419_v3 = vpack.c.bf16 %v2166_v20, %v2164_v2  ;;  %v390_v24 = vmul.f32 0.0625, %v1450_v21  ;;  %v459_v21 = vmul.f32 0.33333334, %v2022_v32 }
 0x1a5   : > { %1451 = vtanh.f32 %v363_v23 }
 0x1a6   : > { %435 = vmatmul.bf16.gmra.mxu2 %v419_v3  ;;  %v398_v26 = vadd.f32 %v390_v24, %v2126_v15  ;;  %v460_v3 = vmul.f32 0.33333334, %v2024_v33 }
 0x1a7   : > { %1002 = vmatpush.bf16.msra.mxu2 %v2002_v22 }
 0x1a8   : > { %v406_v43 = vmul.f32 0.25, %v398_v26 }
 0x1aa   : > { %v365_v27 = vpop.f32.mrf.mxu1  ;;  %v2180_v15 = vadd.f32 %v406_v43, %v382_v46 }
 0x1ab   : > { %v1452_v34 = vpop.eup %1451  ;;  %v366_v37 = vadd.f32 %v2096_v44, %v365_v27  ;;  %1003 = vmatpush.bf16.msra.mxu2 %v2008_v25 }
 0x1ac   : > { %v391_v40 = vmul.f32 0.0625, %v1452_v34 }
 0x1ad   : > { %1453 = vtanh.f32 %v366_v37 }
 0x1ae   : > { %v399_v45 = vadd.f32 %v391_v40, %v2129_v17 }
 0x1af   : > { %1004 = vmatpush.bf16.msra.mxu2 %v2014_v28 }
 0x1b0   : > { %v407_v48 = vmul.f32 0.25, %v399_v45 }
 0x1b2   : > { %v367_v49 = vpop.f32.mrf.mxu1  ;;  %v2182_v50 = vadd.f32 %v407_v48, %v383_v47  ;;  %v461_v48 = vmul.f32 0.33333334, %v2046_v35 }
 0x1b3   : > { %v1454_v51 = vpop.eup %1453  ;;  %v368_v52 = vadd.f32 %v2096_v44, %v367_v49  ;;  %1005 = vmatpush.bf16.msra.mxu2 %v2020_v31 }
 0x1b4   : > { %v420_v17 = vpack.c.bf16 %v2182_v50, %v2180_v15  ;;  %v392_v53 = vmul.f32 0.0625, %v1454_v51  ;;  %v462_v51 = vmul.f32 0.33333334, %v2048_v36 }
 0x1b5   : > { %1455 = vtanh.f32 %v368_v52 }
 0x1b6   : > { %440 = vmatmul.bf16.gmra.mxu2 %v420_v17  ;;  %v400_v54 = vadd.f32 %v392_v53, %v2136_v29 }
 0x1b8   : > { %v408_v59 = vmul.f32 0.25, %v400_v54 }
 0x1ba   : > { %v2192_v1 = vadd.f32 %v408_v59, %v384_v55  ;;  %v464_v55 = vmul.f32 0.33333334, %v2070_v39 }
 0x1bb   : > { %v1456_v57 = vpop.eup %1455 }
 0x1bc   : > { %v393_v58 = vmul.f32 0.0625, %v1456_v57 }
 0x1be   : > { %v401_v60 = vadd.f32 %v393_v58, %v2139_v30 }
 0x1c0   : > { %v409_v0 = vmul.f32 0.25, %v401_v60 }
 0x1c2   : > { %v2194_v56 = vadd.f32 %v409_v0, %v385_v63 }
 0x1c4   : > { %v421_v4 = vpack.c.bf16 %v2194_v56, %v2192_v1 }
 0x1c6   : > { %445 = vmatmul.bf16.gmra.mxu2 %v421_v4 }
 0x219   : > { %v431_v5 = vpop.f32.mrf.mxu2 }
 0x21a   : > { %v432_v29 = vadd.f32 %v2096_v44, %v431_v5 }
 0x21c   : > { %1457 = vtanh.f32 %v432_v29 }
 0x221   : > { %v433_v6 = vpop.f32.mrf.mxu2 }
 0x222   : > { %v1458_v7 = vpop.eup %1457  ;;  %v434_v30 = vadd.f32 %v2096_v44, %v433_v6  ;;  %v465_v6 = vmul.f32 0.33333334, %v2082_v41 }
 0x223   : > { %v467_v8 = vmul.f32 0.0625, %v1458_v7 }
 0x224   : > { %1459 = vtanh.f32 %v434_v30  ;;  %v466_v30 = vmul.f32 0.33333334, %v2084_v42 }
 0x225   : > { %v475_v9 = vadd.f32 %v467_v8, %v2149_v61 }
 0x227   : > { %v483_v23 = vmul.f32 0.6666667, %v475_v9 }
 0x229   : > { %v436_v10 = vpop.f32.mrf.mxu2  ;;  %v2205_v27 = vadd.f32 %v483_v23, %v459_v21 }
 0x22a   : > { %v1460_v12 = vpop.eup %1459  ;;  %v437_v14 = vadd.f32 %v2096_v44, %v436_v10 }
 0x22b   : > { %v468_v18 = vmul.f32 0.0625, %v1460_v12 }
 0x22c   : > { %1461 = vtanh.f32 %v437_v14 }
 0x22d   : > { %v476_v24 = vadd.f32 %v468_v18, %v2151_v62 }
 0x22f   : > { %v484_v26 = vmul.f32 0.6666667, %v476_v24 }
 0x231   : > { %v2207_v34 = vadd.f32 %v484_v26, %v460_v3  ;;  %v438_v37 = vpop.f32.mrf.mxu2 }
 0x232   : > { %v1462_v61 = vpop.eup %1461  ;;  %v439_v40 = vadd.f32 %v2096_v44, %v438_v37 }
 0x233   : > { %v499_v43 = vpack.c.bf16 %v2207_v34, %v2205_v27  ;;  %v469_v45 = vmul.f32 0.0625, %v1462_v61 }
 0x234   : > { %1463 = vtanh.f32 %v439_v40 }
 0x235   : > { %511 = vmatmul.bf16.vlgmr.msra.gmra.mxu3 %v499_v43  ;;  %v477_v32 = vadd.f32 %v469_v45, %v2164_v2 }
 0x236   : > { %1079 = vmatpush.bf16.msra.mxu3 %v1981_v11 }
 0x237   : > { %v485_v49 = vmul.f32 0.6666667, %v477_v32 }
 0x239   : > { %v441_v33 = vpop.f32.mrf.mxu2  ;;  %v2220_v17 = vadd.f32 %v485_v49, %v461_v48 }
 0x23a   : > { %v1464_v62 = vpop.eup %1463  ;;  %v442_v46 = vadd.f32 %v2096_v44, %v441_v33  ;;  %1080 = vmatpush.bf16.msra.mxu3 %v1984_v13 }
 0x23b   : > { %v470_v47 = vmul.f32 0.0625, %v1464_v62 }
 0x23c   : > { %1465 = vtanh.f32 %v442_v46 }
 0x23d   : > { %v478_v52 = vadd.f32 %v470_v47, %v2166_v20 }
 0x23e   : > { %1081 = vmatpush.bf16.msra.mxu3 %v1990_v16 }
 0x23f   : > { %v486_v11 = vmul.f32 0.6666667, %v478_v52 }
 0x241   : > { %v2222_v2 = vadd.f32 %v486_v11, %v462_v51  ;;  %v443_v53 = vpop.f32.mrf.mxu2 }
 0x242   : > { %v1466_v54 = vpop.eup %1465  ;;  %v444_v13 = vadd.f32 %v2096_v44, %v443_v53  ;;  %1082 = vmatpush.bf16.msra.mxu3 %v1996_v19  ;;  %v463_v19 = vmul.f32 0.33333334, %v2068_v38 }
 0x243   : > { %v500_v35 = vpack.c.bf16 %v2222_v2, %v2220_v17  ;;  %v471_v36 = vmul.f32 0.0625, %v1466_v54 }
 0x244   : > { %1467 = vtanh.f32 %v444_v13 }
 0x245   : > { %516 = vmatmul.bf16.gmra.mxu3 %v500_v35  ;;  %v479_v16 = vadd.f32 %v471_v36, %v2180_v15 }
 0x246   : > { %1083 = vmatpush.bf16.msra.mxu3 %v2002_v22 }
 0x247   : > { %v487_v60 = vmul.f32 0.6666667, %v479_v16 }
 0x249   : > { %v446_v20 = vpop.f32.mrf.mxu2  ;;  %v2236_v0 = vadd.f32 %v487_v60, %v463_v19 }
 0x24a   : > { %v1468_v57 = vpop.eup %1467  ;;  %v447_v58 = vadd.f32 %v2096_v44, %v446_v20  ;;  %1084 = vmatpush.bf16.msra.mxu3 %v2008_v25 }
 0x24b   : > { %v472_v59 = vmul.f32 0.0625, %v1468_v57 }
 0x24c   : > { %1469 = vtanh.f32 %v447_v58 }
 0x24d   : > { %v480_v63 = vadd.f32 %v472_v59, %v2182_v50 }
 0x24e   : > { %1085 = vmatpush.bf16.msra.mxu3 %v2014_v28 }
 0x24f   : > { %v488_v22 = vmul.f32 0.6666667, %v480_v63 }
 0x251   : > { %v2238_v15 = vadd.f32 %v488_v22, %v464_v55  ;;  %v448_v4 = vpop.f32.mrf.mxu2 }
 0x252   : > { %v1470_v5 = vpop.eup %1469  ;;  %v449_v25 = vadd.f32 %v2096_v44, %v448_v4  ;;  %1086 = vmatpush.bf16.msra.mxu3 %v2020_v31 }
 0x253   : > { %v501_v38 = vpack.c.bf16 %v2238_v15, %v2236_v0  ;;  %v473_v39 = vmul.f32 0.0625, %v1470_v5 }
 0x254   : > { %1471 = vtanh.f32 %v449_v25 }
 0x255   : > { %521 = vmatmul.bf16.gmra.mxu3 %v501_v38  ;;  %v481_v50 = vadd.f32 %v473_v39, %v2192_v1 }
 0x257   : > { %v489_v7 = vmul.f32 0.6666667, %v481_v50 }
 0x259   : > { %v2248_v10 = vadd.f32 %v489_v7, %v465_v6 }
 0x25a   : > { %v1472_v28 = vpop.eup %1471 }
 0x25b   : > { %v474_v29 = vmul.f32 0.0625, %v1472_v28 }
 0x25d   : > { %v482_v8 = vadd.f32 %v474_v29, %v2194_v56 }
 0x25f   : > { %v490_v9 = vmul.f32 0.6666667, %v482_v8 }
 0x261   : > { %v2250_v31 = vadd.f32 %v490_v9, %v466_v30 }
 0x263   : > { %v502_v12 = vpack.c.bf16 %v2250_v31, %v2248_v10 }
 0x265   : > { %526 = vmatmul.bf16.gmra.mxu3 %v502_v12 }
 0x2b8   : > { %v512_v14 = vpop.f32.mrf.mxu3 }
 0x2b9   : > { %v513_v1 = vadd.f32 %v2096_v44, %v512_v14 }
 0x2bb   : > { %1473 = vtanh.f32 %v513_v1 }
 0x2c0   : > { %v514_v18 = vpop.f32.mrf.mxu3 }
 0x2c1   : > { %v515_v41 = vadd.f32 %v2096_v44, %v514_v18  ;;  %v1474_v42 = vpop.eup %1473 }
 0x2c2   : > { %v540_v21 = vmul.f32 0.0625, %v1474_v42  ;;  %v598_v42 = vmul.f32 0.75, %v2207_v34 }
 0x2c3   : > { %1475 = vtanh.f32 %v515_v41  ;;  %v597_v41 = vmul.f32 0.75, %v2205_v27 }
 0x2c4   : > { %v548_v26 = vadd.f32 %v540_v21, %v2205_v27 }
 0x2c8   : > { %v517_v56 = vpop.f32.mrf.mxu3 }
 0x2c9   : > { %v1476_v23 = vpop.eup %1475  ;;  %v518_v24 = vadd.f32 %v2096_v44, %v517_v56 }
 0x2ca   : > { %v541_v3 = vmul.f32 0.0625, %v1476_v23 }
 0x2cb   : > { %1477 = vtanh.f32 %v518_v24 }
 0x2cc   : > { %v549_v37 = vadd.f32 %v541_v3, %v2207_v34 }
 0x2ce   : > { %v556_v61 = vpack.c.bf16 %v549_v37, %v548_v26 }
 0x2d0   : > { %v519_v40 = vpop.f32.mrf.mxu3  ;;  %568 = vmatmul.bf16.vlgmr.msrb.gmra.mxu0 %v556_v61 }
 0x2d1   : > { %v520_v43 = vadd.f32 %v2096_v44, %v519_v40  ;;  %v1478_v45 = vpop.eup %1477 }
 0x2d2   : > { %v542_v32 = vmul.f32 0.0625, %v1478_v45 }
 0x2d3   : > { %1479 = vtanh.f32 %v520_v43 }
 0x2d4   : > { %v550_v48 = vadd.f32 %v542_v32, %v2220_v17 }
 0x2d8   : > { %v522_v33 = vpop.f32.mrf.mxu3 }
 0x2d9   : > { %v1480_v62 = vpop.eup %1479  ;;  %v523_v47 = vadd.f32 %v2096_v44, %v522_v33 }
 0x2da   : > { %v543_v46 = vmul.f32 0.0625, %v1480_v62 }
 0x2db   : > { %1481 = vtanh.f32 %v523_v47  ;;  %v599_v47 = vmul.f32 0.75, %v2220_v17 }
 0x2dc   : > { %v2263_v49 = vadd.f32 %v543_v46, %v2222_v2 }
 0x2de   : > { %v557_v51 = vpack.c.bf16 %v2263_v49, %v550_v48 }
 0x2e0   : > { %v524_v52 = vpop.f32.mrf.mxu3  ;;  %573 = vmatmul.bf16.gmra.mxu0 %v557_v51  ;;  %v600_v51 = vmul.f32 0.75, %v2222_v2 }
 0x2e1   : > { %v525_v11 = vadd.f32 %v2096_v44, %v524_v52  ;;  %v1482_v53 = vpop.eup %1481 }
 0x2e2   : > { %v544_v54 = vmul.f32 0.0625, %v1482_v53 }
 0x2e3   : > { %1483 = vtanh.f32 %v525_v11 }
 0x2e4   : > { %v2269_v20 = vadd.f32 %v544_v54, %v2236_v0 }
 0x2e8   : > { %v527_v13 = vpop.f32.mrf.mxu3 }
 0x2e9   : > { %v1484_v35 = vpop.eup %1483  ;;  %v528_v16 = vadd.f32 %v2096_v44, %v527_v13 }
 0x2ea   : > { %v545_v36 = vmul.f32 0.0625, %v1484_v35 }
 0x2eb   : > { %1485 = vtanh.f32 %v528_v16 }
 0x2ec   : > { %v2272_v57 = vadd.f32 %v545_v36, %v2238_v15 }
 0x2ee   : > { %v558_v58 = vpack.c.bf16 %v2272_v57, %v2269_v20 }
 0x2f0   : > { %v529_v59 = vpop.f32.mrf.mxu3  ;;  %578 = vmatmul.bf16.gmra.mxu0 %v558_v58 }
 0x2f1   : > { %v530_v19 = vadd.f32 %v2096_v44, %v529_v59  ;;  %v1486_v60 = vpop.eup %1485 }
 0x2f2   : > { %v546_v55 = vmul.f32 0.0625, %v1486_v60 }
 0x2f3   : > { %1487 = vtanh.f32 %v530_v19 }
 0x2f4   : > { %v2278_v4 = vadd.f32 %v546_v55, %v2248_v10 }
 0x2f9   : > { %v1488_v63 = vpop.eup %1487 }
 0x2fa   : > { %v547_v22 = vmul.f32 0.0625, %v1488_v63  ;;  %v601_v63 = vmul.f32 0.75, %v2236_v0 }
 0x2fc   : > { %v2281_v5 = vadd.f32 %v547_v22, %v2250_v31  ;;  %v602_v22 = vmul.f32 0.75, %v2238_v15 }
 0x2fe   : > { %v559_v25 = vpack.c.bf16 %v2281_v5, %v2278_v4 }
 0x300   : > { %583 = vmatmul.bf16.gmra.mxu0 %v559_v25 }
 0x34d   : > { %v569_v38 = vpop.f32.mrf.mxu0 }
 0x34e   : > { %v570_v39 = vadd.f32 %v2096_v44, %v569_v38 }
 0x350   : > { %1489 = vtanh.f32 %v570_v39 }
 0x355   : > { %v571_v50 = vpop.f32.mrf.mxu0 }
 0x356   : > { %v1490_v28 = vpop.eup %1489  ;;  %v572_v29 = vadd.f32 %v2096_v44, %v571_v50 }
 0x357   : > { %v605_v6 = vmul.f32 0.0625, %v1490_v28 }
 0x358   : > { %1491 = vtanh.f32 %v572_v29 }
 0x359   : > { %v613_v7 = vadd.f32 %v605_v6, %v548_v26 }
 0x35b   : > { %v621_v14 = vmul.f32 0.25, %v613_v7 }
 0x35d   : > { %v574_v30 = vpop.f32.mrf.mxu0  ;;  %v2290_v56 = vadd.f32 %v621_v14, %v597_v41  ;;  %v604_v14 = vmul.f32 0.75, %v2250_v31 }
 0x35e   : > { %v1492_v8 = vpop.eup %1491  ;;  %v575_v9 = vadd.f32 %v2096_v44, %v574_v30 }
 0x35f   : > { %v606_v12 = vmul.f32 0.0625, %v1492_v8 }
 0x360   : > { %1493 = vtanh.f32 %v575_v9 }
 0x361   : > { %v614_v1 = vadd.f32 %v606_v12, %v549_v37  ;;  %v603_v12 = vmul.f32 0.75, %v2248_v10 }
 0x363   : > { %v622_v18 = vmul.f32 0.25, %v614_v1 }
 0x365   : > { %v576_v21 = vpop.f32.mrf.mxu0  ;;  %v2292_v23 = vadd.f32 %v622_v18, %v598_v42 }
 0x366   : > { %v1494_v3 = vpop.eup %1493  ;;  %v577_v24 = vadd.f32 %v2096_v44, %v576_v21 }
 0x367   : > { %v637_v26 = vpack.c.bf16 %v2292_v23, %v2290_v56  ;;  %v607_v61 = vmul.f32 0.0625, %v1494_v3 }
 0x368   : > { %1495 = vtanh.f32 %v577_v24 }
 0x369   : > { %649 = vmatmul.bf16.vlgmr.msrb.gmra.mxu1 %v637_v26  ;;  %v615_v37 = vadd.f32 %v607_v61, %v550_v48 }
 0x36b   : > { %v623_v33 = vmul.f32 0.25, %v615_v37 }
 0x36d   : > { %v579_v40 = vpop.f32.mrf.mxu0  ;;  %v2301_v11 = vadd.f32 %v623_v33, %v599_v47  ;;  %v678_v33 = vmul.f32 0.33333334, %v2205_v27 }
 0x36e   : > { %v1496_v43 = vpop.eup %1495  ;;  %v580_v45 = vadd.f32 %v2096_v44, %v579_v40 }
 0x36f   : > { %v608_v32 = vmul.f32 0.0625, %v1496_v43 }
 0x370   : > { %1497 = vtanh.f32 %v580_v45 }
 0x371   : > { %v616_v62 = vadd.f32 %v608_v32, %v2263_v49 }
 0x373   : > { %v624_v46 = vmul.f32 0.25, %v616_v62  ;;  %v679_v62 = vmul.f32 0.33333334, %v2207_v34 }
 0x375   : > { %v581_v52 = vpop.f32.mrf.mxu0  ;;  %v2303_v53 = vadd.f32 %v624_v46, %v600_v51 }
 0x376   : > { %v1498_v48 = vpop.eup %1497  ;;  %v582_v54 = vadd.f32 %v2096_v44, %v581_v52 }
 0x377   : > { %v638_v13 = vpack.c.bf16 %v2303_v53, %v2301_v11  ;;  %v609_v35 = vmul.f32 0.0625, %v1498_v48 }
 0x378   : > { %1499 = vtanh.f32 %v582_v54 }
 0x379   : > { %654 = vmatmul.bf16.gmra.mxu1 %v638_v13  ;;  %v617_v49 = vadd.f32 %v609_v35, %v2269_v20 }
 0x37b   : > { %v625_v19 = vmul.f32 0.25, %v617_v49 }
 0x37d   : > { %v584_v36 = vpop.f32.mrf.mxu0  ;;  %v2313_v38 = vadd.f32 %v625_v19, %v601_v63 }
 0x37e   : > { %v1500_v16 = vpop.eup %1499  ;;  %v585_v58 = vadd.f32 %v2096_v44, %v584_v36 }
 0x37f   : > { %v610_v59 = vmul.f32 0.0625, %v1500_v16 }
 0x380   : > { %1501 = vtanh.f32 %v585_v58  ;;  %v680_v58 = vmul.f32 0.33333334, %v2220_v17 }
 0x381   : > { %v618_v60 = vadd.f32 %v610_v59, %v2272_v57  ;;  %v681_v59 = vmul.f32 0.33333334, %v2222_v2 }
 0x383   : > { %v626_v55 = vmul.f32 0.25, %v618_v60 }
 0x385   : > { %v586_v25 = vpop.f32.mrf.mxu0  ;;  %v2315_v39 = vadd.f32 %v626_v55, %v602_v22 }
 0x386   : > { %v1502_v20 = vpop.eup %1501  ;;  %v587_v50 = vadd.f32 %v2096_v44, %v586_v25 }
 0x387   : > { %v639_v28 = vpack.c.bf16 %v2315_v39, %v2313_v38  ;;  %v611_v29 = vmul.f32 0.0625, %v1502_v20 }
 0x388   : > { %1503 = vtanh.f32 %v587_v50 }
 0x389   : > { %659 = vmatmul.bf16.gmra.mxu1 %v639_v28  ;;  %v619_v57 = vadd.f32 %v611_v29, %v2278_v4 }
 0x38b   : > { %v627_v30 = vmul.f32 0.25, %v619_v57 }
 0x38d   : > { %v2324_v1 = vadd.f32 %v627_v30, %v603_v12 }
 0x38e   : > { %v1504_v6 = vpop.eup %1503 }
 0x38f   : > { %v612_v7 = vmul.f32 0.0625, %v1504_v6  ;;  %v682_v6 = vmul.f32 0.33333334, %v2236_v0 }
 0x391   : > { %v620_v8 = vadd.f32 %v612_v7, %v2281_v5  ;;  %v683_v7 = vmul.f32 0.33333334, %v2238_v15 }
 0x393   : > { %v628_v9 = vmul.f32 0.25, %v620_v8 }
 0x395   : > { %v2326_v18 = vadd.f32 %v628_v9, %v604_v14 }
 0x397   : > { %v640_v41 = vpack.c.bf16 %v2326_v18, %v2324_v1 }
 0x399   : > { %664 = vmatmul.bf16.gmra.mxu1 %v640_v41 }
 0x3e6   : > { %v650_v42 = vpop.f32.mrf.mxu1 }
 0x3e7   : > { %v651_v4 = vadd.f32 %v2096_v44, %v650_v42 }
 0x3e9   : > { %1505 = vtanh.f32 %v651_v4 }
 0x3ee   : > { %v652_v21 = vpop.f32.mrf.mxu1 }
 0x3ef   : > { %v1506_v3 = vpop.eup %1505  ;;  %v653_v5 = vadd.f32 %v2096_v44, %v652_v21 }
 0x3f0   : > { %v686_v24 = vmul.f32 0.0625, %v1506_v3  ;;  %v684_v3 = vmul.f32 0.33333334, %v2248_v10 }
 0x3f1   : > { %1507 = vtanh.f32 %v653_v5  ;;  %v685_v5 = vmul.f32 0.33333334, %v2250_v31 }
 0x3f2   : > { %v694_v26 = vadd.f32 %v686_v24, %v2290_v56 }
 0x3f4   : > { %v702_v45 = vmul.f32 0.6666667, %v694_v26 }
 0x3f6   : > { %v655_v61 = vpop.f32.mrf.mxu1  ;;  %v2337_v47 = vadd.f32 %v702_v45, %v678_v33 }
 0x3f7   : > { %v1508_v37 = vpop.eup %1507  ;;  %v656_v40 = vadd.f32 %v2096_v44, %v655_v61 }
 0x3f8   : > { %v687_v43 = vmul.f32 0.0625, %v1508_v37 }
 0x3f9   : > { %1509 = vtanh.f32 %v656_v40 }
 0x3fa   : > { %v695_v32 = vadd.f32 %v687_v43, %v2292_v23 }
 0x3fc   : > { %v703_v46 = vmul.f32 0.6666667, %v695_v32 }
 0x3fe   : > { %v2339_v51 = vadd.f32 %v703_v46, %v679_v62  ;;  %v657_v52 = vpop.f32.mrf.mxu1 }
 0x3ff   : > { %v1510_v56 = vpop.eup %1509  ;;  %v658_v48 = vadd.f32 %v2096_v44, %v657_v52 }
 0x400   : > { %v718_v54 = vpack.c.bf16 %v2339_v51, %v2337_v47  ;;  %v688_v13 = vmul.f32 0.0625, %v1510_v56 }
 0x401   : > { %1511 = vtanh.f32 %v658_v48 }
 0x402   : > { %730 = vmatmul.bf16.vlgmr.msrb.gmra.mxu2 %v718_v54  ;;  %v696_v23 = vadd.f32 %v688_v13, %v2301_v11 }
 0x404   : > { %v704_v36 = vmul.f32 0.6666667, %v696_v23 }
 0x406   : > { %v660_v27 = vpop.f32.mrf.mxu1  ;;  %v2349_v60 = vadd.f32 %v704_v36, %v680_v58 }
 0x407   : > { %v1512_v35 = vpop.eup %1511  ;;  %v661_v34 = vadd.f32 %v2096_v44, %v660_v27 }
 0x408   : > { %v689_v49 = vmul.f32 0.0625, %v1512_v35 }
 0x409   : > { %1513 = vtanh.f32 %v661_v34 }
 0x40a   : > { %v697_v16 = vadd.f32 %v689_v49, %v2303_v53 }
 0x40c   : > { %v705_v19 = vmul.f32 0.6666667, %v697_v16 }
 0x40e   : > { %v2351_v55 = vadd.f32 %v705_v19, %v681_v59  ;;  %v662_v63 = vpop.f32.mrf.mxu1 }
 0x40f   : > { %v1514_v11 = vpop.eup %1513  ;;  %v663_v22 = vadd.f32 %v2096_v44, %v662_v63 }
 0x410   : > { %v719_v25 = vpack.c.bf16 %v2351_v55, %v2349_v60  ;;  %v690_v20 = vmul.f32 0.0625, %v1514_v11 }
 0x411   : > { %1515 = vtanh.f32 %v663_v22 }
 0x412   : > { %735 = vmatmul.bf16.gmra.mxu2 %v719_v25  ;;  %v698_v53 = vadd.f32 %v690_v20, %v2313_v38 }
 0x414   : > { %v706_v29 = vmul.f32 0.6666667, %v698_v53 }
 0x416   : > { %v665_v17 = vpop.f32.mrf.mxu1  ;;  %v2361_v8 = vadd.f32 %v706_v29, %v682_v6 }
 0x417   : > { %v1516_v50 = vpop.eup %1515  ;;  %v666_v2 = vadd.f32 %v2096_v44, %v665_v17 }
 0x418   : > { %v691_v28 = vmul.f32 0.0625, %v1516_v50 }
 0x419   : > { %1517 = vtanh.f32 %v666_v2 }
 0x41a   : > { %v699_v57 = vadd.f32 %v691_v28, %v2315_v39 }
 0x41c   : > { %v707_v30 = vmul.f32 0.6666667, %v699_v57 }
 0x41e   : > { %v2363_v9 = vadd.f32 %v707_v30, %v683_v7  ;;  %v667_v12 = vpop.f32.mrf.mxu1 }
 0x41f   : > { %v1518_v38 = vpop.eup %1517  ;;  %v668_v14 = vadd.f32 %v2096_v44, %v667_v12 }
 0x420   : > { %v720_v41 = vpack.c.bf16 %v2363_v9, %v2361_v8  ;;  %v692_v42 = vmul.f32 0.0625, %v1518_v38 }
 0x421   : > { %1519 = vtanh.f32 %v668_v14 }
 0x422   : > { %740 = vmatmul.bf16.gmra.mxu2 %v720_v41  ;;  %v700_v39 = vadd.f32 %v692_v42, %v2324_v1 }
 0x424   : > { %v708_v15 = vmul.f32 0.6666667, %v700_v39 }
 0x426   : > { %v2372_v26 = vadd.f32 %v708_v15, %v684_v3 }
 0x427   : > { %v1520_v0 = vpop.eup %1519 }
 0x428   : > { %v693_v4 = vmul.f32 0.0625, %v1520_v0 }
 0x42a   : > { %v701_v21 = vadd.f32 %v693_v4, %v2326_v18 }
 0x42c   : > { %v709_v24 = vmul.f32 0.6666667, %v701_v21 }
 0x42e   : > { %v2374_v61 = vadd.f32 %v709_v24, %v685_v5 }
 0x430   : > { %v721_v37 = vpack.c.bf16 %v2374_v61, %v2372_v26 }
 0x432   : > { %745 = vmatmul.bf16.gmra.mxu2 %v721_v37 }
 0x485   : > { %v731_v40 = vpop.f32.mrf.mxu2 }
 0x486   : > { %v732_v1 = vadd.f32 %v2096_v44, %v731_v40 }
 0x488   : > { %1521 = vtanh.f32 %v732_v1 }
 0x48d   : > { %v733_v43 = vpop.f32.mrf.mxu2 }
 0x48e   : > { %v734_v18 = vadd.f32 %v2096_v44, %v733_v43  ;;  %v1522_v10 = vpop.eup %1521  ;;  %v816_v43 = vmul.f32 0.75, %v2337_v47 }
 0x48f   : > { %v759_v45 = vmul.f32 0.0625, %v1522_v10 }
 0x490   : > { %1523 = vtanh.f32 %v734_v18  ;;  %v817_v18 = vmul.f32 0.75, %v2339_v51 }
 0x491   : > { %v767_v46 = vadd.f32 %v759_v45, %v2337_v47 }
 0x495   : > { %v736_v31 = vpop.f32.mrf.mxu2 }
 0x496   : > { %v1524_v32 = vpop.eup %1523  ;;  %v737_v62 = vadd.f32 %v2096_v44, %v736_v31 }
 0x497   : > { %v760_v33 = vmul.f32 0.0625, %v1524_v32 }
 0x498   : > { %1525 = vtanh.f32 %v737_v62 }
 0x499   : > { %v768_v52 = vadd.f32 %v760_v33, %v2339_v51 }
 0x49b   : > { %v775_v56 = vpack.c.bf16 %v768_v52, %v767_v46 }
 0x49d   : > { %v738_v48 = vpop.f32.mrf.mxu2  ;;  %787 = vmatmul.bf16.vlgmr.msrb.gmra.mxu3 %v775_v56 }
 0x49e   : > { %v739_v54 = vadd.f32 %v2096_v44, %v738_v48  ;;  %v1526_v13 = vpop.eup %1525 }
 0x49f   : > { %v761_v23 = vmul.f32 0.0625, %v1526_v13 }
 0x4a0   : > { %1527 = vtanh.f32 %v739_v54 }
 0x4a1   : > { %v769_v36 = vadd.f32 %v761_v23, %v2349_v60 }
 0x4a5   : > { %v741_v27 = vpop.f32.mrf.mxu2 }
 0x4a6   : > { %v1528_v35 = vpop.eup %1527  ;;  %v742_v49 = vadd.f32 %v2096_v44, %v741_v27 }
 0x4a7   : > { %v762_v34 = vmul.f32 0.0625, %v1528_v35 }
 0x4a8   : > { %1529 = vtanh.f32 %v742_v49  ;;  %v818_v49 = vmul.f32 0.75, %v2349_v60 }
 0x4a9   : > { %v2387_v16 = vadd.f32 %v762_v34, %v2351_v55 }
 0x4ab   : > { %v776_v58 = vpack.c.bf16 %v2387_v16, %v769_v36 }
 0x4ad   : > { %v743_v59 = vpop.f32.mrf.mxu2  ;;  %792 = vmatmul.bf16.gmra.mxu3 %v776_v58  ;;  %v819_v58 = vmul.f32 0.75, %v2351_v55 }
 0x4ae   : > { %v744_v19 = vadd.f32 %v2096_v44, %v743_v59  ;;  %v1530_v63 = vpop.eup %1529 }
 0x4af   : > { %v763_v11 = vmul.f32 0.0625, %v1530_v63 }
 0x4b0   : > { %1531 = vtanh.f32 %v744_v19 }
 0x4b1   : > { %v2393_v17 = vadd.f32 %v763_v11, %v2361_v8 }
 0x4b5   : > { %v746_v22 = vpop.f32.mrf.mxu2 }
 0x4b6   : > { %v1532_v25 = vpop.eup %1531  ;;  %v747_v53 = vadd.f32 %v2096_v44, %v746_v22 }
 0x4b7   : > { %v764_v20 = vmul.f32 0.0625, %v1532_v25 }
 0x4b8   : > { %1533 = vtanh.f32 %v747_v53 }
 0x4b9   : > { %v2396_v50 = vadd.f32 %v764_v20, %v2363_v9 }
 0x4bb   : > { %v777_v2 = vpack.c.bf16 %v2396_v50, %v2393_v17 }
 0x4bd   : > { %v748_v28 = vpop.f32.mrf.mxu2  ;;  %797 = vmatmul.bf16.gmra.mxu3 %v777_v2 }
 0x4be   : > { %v749_v29 = vadd.f32 %v2096_v44, %v748_v28  ;;  %v1534_v57 = vpop.eup %1533  ;;  %v2412_v44 = vld [vmem:[%s2672_s2] ss:$0 sm:$0xff] }
 0x4bf   : > { %v765_v6 = vmul.f32 0.0625, %v1534_v57 }
 0x4c0   : > { %1535 = vtanh.f32 %v749_v29 }
 0x4c1   : > { %v2402_v12 = vadd.f32 %v765_v6, %v2372_v26 }
 0x4c6   : > { %v1536_v7 = vpop.eup %1535 }
 0x4c7   : > { %v766_v30 = vmul.f32 0.0625, %v1536_v7  ;;  %v820_v7 = vmul.f32 0.75, %v2361_v8 }
 0x4c9   : > { %v2405_v38 = vadd.f32 %v766_v30, %v2374_v61  ;;  %v821_v30 = vmul.f32 0.75, %v2363_v9 }
 0x4cb   : > { %v778_v14 = vpack.c.bf16 %v2405_v38, %v2402_v12 }
 0x4cd   : > { %802 = vmatmul.bf16.gmra.mxu3 %v778_v14 }
 0x520   : > { %v788_v41 = vpop.f32.mrf.mxu3 }
 0x521   : > { %v789_v42 = vadd.f32 %v2412_v44, %v788_v41 }
 0x523   : > { %1537 = vtanh.f32 %v789_v42 }
 0x528   : > { %v790_v39 = vpop.f32.mrf.mxu3 }
 0x529   : > { %v1538_v0 = vpop.eup %1537  ;;  %v791_v4 = vadd.f32 %v2412_v44, %v790_v39 }
 0x52a   : > { %v824_v15 = vmul.f32 0.0625, %v1538_v0 }
 0x52b   : > { %1539 = vtanh.f32 %v791_v4 }
 0x52c   : > { %v832_v21 = vadd.f32 %v824_v15, %v767_v46 }
 0x52e   : > { %v840_v40 = vmul.f32 0.25, %v832_v21 }
 0x530   : > { %v793_v3 = vpop.f32.mrf.mxu3  ;;  %v2419_v45 = vadd.f32 %v840_v40, %v816_v43  ;;  %v823_v40 = vmul.f32 0.75, %v2374_v61 }
 0x531   : > { %v1540_v5 = vpop.eup %1539  ;;  %v794_v24 = vadd.f32 %v2412_v44, %v793_v3 }
 0x532   : > { %v825_v37 = vmul.f32 0.0625, %v1540_v5 }
 0x533   : > { %1541 = vtanh.f32 %v794_v24 }
 0x534   : > { %v833_v1 = vadd.f32 %v825_v37, %v768_v52  ;;  %v822_v37 = vmul.f32 0.75, %v2372_v26 }
 0x536   : > { %v841_v10 = vmul.f32 0.25, %v833_v1 }
 0x538   : > { %v2421_v31 = vadd.f32 %v841_v10, %v817_v18  ;;  %v795_v32 = vpop.f32.mrf.mxu3 }
 0x539   : > { %v1542_v33 = vpop.eup %1541  ;;  %v796_v62 = vadd.f32 %v2412_v44, %v795_v32 }
 0x53a   : > { %v856_v46 = vpack.c.bf16 %v2421_v31, %v2419_v45  ;;  %v826_v56 = vmul.f32 0.0625, %v1542_v33 }
 0x53b   : > { %1543 = vtanh.f32 %v796_v62 }
 0x53c   : > { %868 = vmatmul.bf16.vlgmr.msra.gmra.mxu0 %v856_v46  ;;  %v834_v52 = vadd.f32 %v826_v56, %v769_v36 }
 0x53e   : > { %v842_v27 = vmul.f32 0.25, %v834_v52 }
 0x540   : > { %v798_v48 = vpop.f32.mrf.mxu3  ;;  %v2430_v19 = vadd.f32 %v842_v27, %v818_v49  ;;  %v897_v27 = vmul.f32 0.33333334, %v2337_v47 }
 0x541   : > { %v1544_v54 = vpop.eup %1543  ;;  %v799_v13 = vadd.f32 %v2412_v44, %v798_v48 }
 0x542   : > { %v827_v23 = vmul.f32 0.0625, %v1544_v54 }
 0x543   : > { %1545 = vtanh.f32 %v799_v13 }
 0x544   : > { %v835_v35 = vadd.f32 %v827_v23, %v2387_v16 }
 0x546   : > { %v843_v34 = vmul.f32 0.25, %v835_v35  ;;  %v898_v35 = vmul.f32 0.33333334, %v2339_v51 }
 0x548   : > { %v800_v59 = vpop.f32.mrf.mxu3  ;;  %v2432_v63 = vadd.f32 %v843_v34, %v819_v58 }
 0x549   : > { %v1546_v36 = vpop.eup %1545  ;;  %v801_v11 = vadd.f32 %v2412_v44, %v800_v59 }
 0x54a   : > { %v857_v22 = vpack.c.bf16 %v2432_v63, %v2430_v19  ;;  %v828_v25 = vmul.f32 0.0625, %v1546_v36 }
 0x54b   : > { %1547 = vtanh.f32 %v801_v11 }
 0x54c   : > { %873 = vmatmul.bf16.gmra.mxu0 %v857_v22  ;;  %v836_v16 = vadd.f32 %v828_v25, %v2393_v17 }
 0x54e   : > { %v844_v29 = vmul.f32 0.25, %v836_v16 }
 0x550   : > { %v803_v20 = vpop.f32.mrf.mxu3  ;;  %v2442_v41 = vadd.f32 %v844_v29, %v820_v7 }
 0x551   : > { %v1548_v53 = vpop.eup %1547  ;;  %v804_v2 = vadd.f32 %v2412_v44, %v803_v20 }
 0x552   : > { %v829_v28 = vmul.f32 0.0625, %v1548_v53 }
 0x553   : > { %1549 = vtanh.f32 %v804_v2  ;;  %v899_v2 = vmul.f32 0.33333334, %v2349_v60 }
 0x554   : > { %v837_v57 = vadd.f32 %v829_v28, %v2396_v50  ;;  %v900_v28 = vmul.f32 0.33333334, %v2351_v55 }
 0x556   : > { %v845_v6 = vmul.f32 0.25, %v837_v57 }
 0x558   : > { %v805_v14 = vpop.f32.mrf.mxu3  ;;  %v2444_v42 = vadd.f32 %v845_v6, %v821_v30 }
 0x559   : > { %v1550_v17 = vpop.eup %1549  ;;  %v806_v39 = vadd.f32 %v2412_v44, %v805_v14 }
 0x55a   : > { %v858_v0 = vpack.c.bf16 %v2444_v42, %v2442_v41  ;;  %v830_v4 = vmul.f32 0.0625, %v1550_v17 }
 0x55b   : > { %1551 = vtanh.f32 %v806_v39 }
 0x55c   : > { %878 = vmatmul.bf16.gmra.mxu0 %v858_v0  ;;  %v838_v50 = vadd.f32 %v830_v4, %v2402_v12 }
 0x55e   : > { %v846_v3 = vmul.f32 0.25, %v838_v50 }
 0x560   : > { %v2453_v1 = vadd.f32 %v846_v3, %v822_v37 }
 0x561   : > { %v1552_v15 = vpop.eup %1551 }
 0x562   : > { %v831_v21 = vmul.f32 0.0625, %v1552_v15  ;;  %v901_v15 = vmul.f32 0.33333334, %v2361_v8 }
 0x564   : > { %v839_v5 = vadd.f32 %v831_v21, %v2405_v38  ;;  %v902_v21 = vmul.f32 0.33333334, %v2363_v9 }
 0x566   : > { %v847_v24 = vmul.f32 0.25, %v839_v5 }
 0x568   : > { %v2455_v43 = vadd.f32 %v847_v24, %v823_v40 }
 0x56a   : > { %v859_v18 = vpack.c.bf16 %v2455_v43, %v2453_v1 }
 0x56c   : > { %883 = vmatmul.bf16.gmra.mxu0 %v859_v18 }
 0x5b9   : > { %v869_v10 = vpop.f32.mrf.mxu0 }
 0x5ba   : > { %v870_v12 = vadd.f32 %v2412_v44, %v869_v10 }
 0x5bc   : > { %1553 = vtanh.f32 %v870_v12 }
 0x5c1   : > { %v871_v32 = vpop.f32.mrf.mxu0 }
 0x5c2   : > { %v1554_v33 = vpop.eup %1553  ;;  %v872_v38 = vadd.f32 %v2412_v44, %v871_v32 }
 0x5c3   : > { %v905_v62 = vmul.f32 0.0625, %v1554_v33  ;;  %v903_v33 = vmul.f32 0.33333334, %v2372_v26 }
 0x5c4   : > { %1555 = vtanh.f32 %v872_v38  ;;  %v904_v38 = vmul.f32 0.33333334, %v2374_v61 }
 0x5c5   : > { %v913_v46 = vadd.f32 %v905_v62, %v2419_v45 }
 0x5c7   : > { %v921_v13 = vmul.f32 0.6666667, %v913_v46 }
 0x5c9   : > { %v874_v56 = vpop.f32.mrf.mxu0  ;;  %v2466_v49 = vadd.f32 %v921_v13, %v897_v27 }
 0x5ca   : > { %v1556_v52 = vpop.eup %1555  ;;  %v875_v48 = vadd.f32 %v2412_v44, %v874_v56 }
 0x5cb   : > { %v906_v54 = vmul.f32 0.0625, %v1556_v52 }
 0x5cc   : > { %1557 = vtanh.f32 %v875_v48 }
 0x5cd   : > { %v914_v23 = vadd.f32 %v906_v54, %v2421_v31 }
 0x5cf   : > { %v922_v34 = vmul.f32 0.6666667, %v914_v23 }
 0x5d1   : > { %v2468_v58 = vadd.f32 %v922_v34, %v898_v35  ;;  %v876_v59 = vpop.f32.mrf.mxu0 }
 0x5d2   : > { %v1558_v45 = vpop.eup %1557  ;;  %v877_v36 = vadd.f32 %v2412_v44, %v876_v59 }
 0x5d3   : > { %v937_v11 = vpack.c.bf16 %v2468_v58, %v2466_v49  ;;  %v907_v22 = vmul.f32 0.0625, %v1558_v45 }
 0x5d4   : > { %1559 = vtanh.f32 %v877_v36 }
 0x5d5   : > { %949 = vmatmul.bf16.vlgmr.msra.gmra.mxu1 %v937_v11  ;;  %v915_v31 = vadd.f32 %v907_v22, %v2430_v19 }
 0x5d7   : > { %v923_v20 = vmul.f32 0.6666667, %v915_v31 }
 0x5d9   : > { %v879_v47 = vpop.f32.mrf.mxu0  ;;  %v2478_v57 = vadd.f32 %v923_v20, %v899_v2 }
 0x5da   : > { %v1560_v25 = vpop.eup %1559  ;;  %v880_v51 = vadd.f32 %v2412_v44, %v879_v47 }
 0x5db   : > { %v908_v16 = vmul.f32 0.0625, %v1560_v25 }
 0x5dc   : > { %1561 = vtanh.f32 %v880_v51 }
 0x5dd   : > { %v916_v53 = vadd.f32 %v908_v16, %v2432_v63 }
 0x5df   : > { %v924_v29 = vmul.f32 0.6666667, %v916_v53 }
 0x5e1   : > { %v2480_v6 = vadd.f32 %v924_v29, %v900_v28  ;;  %v881_v7 = vpop.f32.mrf.mxu0 }
 0x5e2   : > { %v1562_v19 = vpop.eup %1561  ;;  %v882_v30 = vadd.f32 %v2412_v44, %v881_v7 }
 0x5e3   : > { %v938_v14 = vpack.c.bf16 %v2480_v6, %v2478_v57  ;;  %v909_v17 = vmul.f32 0.0625, %v1562_v19 }
 0x5e4   : > { %1563 = vtanh.f32 %v882_v30 }
 0x5e5   : > { %954 = vmatmul.bf16.gmra.mxu1 %v938_v14  ;;  %v917_v63 = vadd.f32 %v909_v17, %v2442_v41 }
 0x5e7   : > { %v925_v4 = vmul.f32 0.6666667, %v917_v63 }
 0x5e9   : > { %v884_v60 = vpop.f32.mrf.mxu0  ;;  %v2490_v5 = vadd.f32 %v925_v4, %v901_v15 }
 0x5ea   : > { %v1564_v39 = vpop.eup %1563  ;;  %v885_v55 = vadd.f32 %v2412_v44, %v884_v60 }
 0x5eb   : > { %v910_v0 = vmul.f32 0.0625, %v1564_v39 }
 0x5ec   : > { %1565 = vtanh.f32 %v885_v55 }
 0x5ed   : > { %v918_v50 = vadd.f32 %v910_v0, %v2444_v42 }
 0x5ef   : > { %v926_v3 = vmul.f32 0.6666667, %v918_v50 }
 0x5f1   : > { %v2492_v24 = vadd.f32 %v926_v3, %v902_v21  ;;  %v886_v37 = vpop.f32.mrf.mxu0 }
 0x5f2   : > { %v1566_v41 = vpop.eup %1565  ;;  %v887_v40 = vadd.f32 %v2412_v44, %v886_v37 }
 0x5f3   : > { %v939_v18 = vpack.c.bf16 %v2492_v24, %v2490_v5  ;;  %v911_v10 = vmul.f32 0.0625, %v1566_v41 }
 0x5f4   : > { %1567 = vtanh.f32 %v887_v40 }
 0x5f5   : > { %959 = vmatmul.bf16.gmra.mxu1 %v939_v18  ;;  %v919_v42 = vadd.f32 %v911_v10, %v2453_v1 }
 0x5f7   : > { %v927_v9 = vmul.f32 0.6666667, %v919_v42 }
 0x5f9   : > { %v2501_v46 = vadd.f32 %v927_v9, %v903_v33 }
 0x5fa   : > { %v1568_v8 = vpop.eup %1567 }
 0x5fb   : > { %v912_v12 = vmul.f32 0.0625, %v1568_v8 }
 0x5fd   : > { %v920_v32 = vadd.f32 %v912_v12, %v2455_v43 }
 0x5ff   : > { %v928_v62 = vmul.f32 0.6666667, %v920_v32 }
 0x601   : > { %v2503_v56 = vadd.f32 %v928_v62, %v904_v38 }
 0x603   : > { %v940_v52 = vpack.c.bf16 %v2503_v56, %v2501_v46 }
 0x605   : > { %964 = vmatmul.bf16.gmra.mxu1 %v940_v52 }
 0x652   : > { %v950_v48 = vpop.f32.mrf.mxu1 }
 0x653   : > { %v951_v1 = vadd.f32 %v2412_v44, %v950_v48 }
 0x655   : > { %1569 = vtanh.f32 %v951_v1 }
 0x65a   : > { %v952_v54 = vpop.f32.mrf.mxu1 }
 0x65b   : > { %v953_v43 = vadd.f32 %v2412_v44, %v952_v54  ;;  %v1570_v26 = vpop.eup %1569  ;;  %v1035_v54 = vmul.f32 0.75, %v2466_v49 }
 0x65c   : > { %v978_v13 = vmul.f32 0.0625, %v1570_v26 }
 0x65d   : > { %1571 = vtanh.f32 %v953_v43  ;;  %v1036_v43 = vmul.f32 0.75, %v2468_v58 }
 0x65e   : > { %v986_v34 = vadd.f32 %v978_v13, %v2466_v49 }
 0x662   : > { %v955_v61 = vpop.f32.mrf.mxu1 }
 0x663   : > { %v1572_v23 = vpop.eup %1571  ;;  %v956_v35 = vadd.f32 %v2412_v44, %v955_v61 }
 0x664   : > { %v979_v27 = vmul.f32 0.0625, %v1572_v23 }
 0x665   : > { %1573 = vtanh.f32 %v956_v35 }
 0x666   : > { %v987_v59 = vadd.f32 %v979_v27, %v2468_v58 }
 0x668   : > { %v994_v45 = vpack.c.bf16 %v987_v59, %v986_v34 }
 0x66a   : > { %v957_v36 = vpop.f32.mrf.mxu1  ;;  %1006 = vmatmul.bf16.vlgmr.msra.gmra.mxu2 %v994_v45 }
 0x66b   : > { %v958_v11 = vadd.f32 %v2412_v44, %v957_v36  ;;  %v1574_v22 = vpop.eup %1573 }
 0x66c   : > { %v980_v31 = vmul.f32 0.0625, %v1574_v22 }
 0x66d   : > { %1575 = vtanh.f32 %v958_v11 }
 0x66e   : > { %v988_v20 = vadd.f32 %v980_v31, %v2478_v57 }
 0x672   : > { %v960_v47 = vpop.f32.mrf.mxu1 }
 0x673   : > { %v1576_v25 = vpop.eup %1575  ;;  %v961_v16 = vadd.f32 %v2412_v44, %v960_v47 }
 0x674   : > { %v981_v51 = vmul.f32 0.0625, %v1576_v25 }
 0x675   : > { %1577 = vtanh.f32 %v961_v16  ;;  %v1037_v16 = vmul.f32 0.75, %v2478_v57 }
 0x676   : > { %v2516_v53 = vadd.f32 %v981_v51, %v2480_v6 }
 0x678   : > { %v995_v2 = vpack.c.bf16 %v2516_v53, %v988_v20 }
 0x67a   : > { %v962_v28 = vpop.f32.mrf.mxu1  ;;  %1011 = vmatmul.bf16.gmra.mxu2 %v995_v2  ;;  %v1038_v2 = vmul.f32 0.75, %v2480_v6 }
 0x67b   : > { %v963_v29 = vadd.f32 %v2412_v44, %v962_v28  ;;  %v1578_v7 = vpop.eup %1577 }
 0x67c   : > { %v982_v19 = vmul.f32 0.0625, %v1578_v7 }
 0x67d   : > { %1579 = vtanh.f32 %v963_v29 }
 0x67e   : > { %v2522_v60 = vadd.f32 %v982_v19, %v2490_v5 }
 0x682   : > { %v965_v30 = vpop.f32.mrf.mxu1 }
 0x683   : > { %v1580_v14 = vpop.eup %1579  ;;  %v966_v63 = vadd.f32 %v2412_v44, %v965_v30 }
 0x684   : > { %v983_v17 = vmul.f32 0.0625, %v1580_v14 }
 0x685   : > { %1581 = vtanh.f32 %v966_v63 }
 0x686   : > { %v2525_v39 = vadd.f32 %v983_v17, %v2492_v24 }
 0x688   : > { %v996_v55 = vpack.c.bf16 %v2525_v39, %v2522_v60 }
 0x68a   : > { %v967_v0 = vpop.f32.mrf.mxu1  ;;  %1016 = vmatmul.bf16.gmra.mxu2 %v996_v55 }
 0x68b   : > { %v968_v4 = vadd.f32 %v2412_v44, %v967_v0  ;;  %v1582_v50 = vpop.eup %1581 }
 0x68c   : > { %v984_v15 = vmul.f32 0.0625, %v1582_v50 }
 0x68d   : > { %1583 = vtanh.f32 %v968_v4 }
 0x68e   : > { %v2531_v37 = vadd.f32 %v984_v15, %v2501_v46 }
 0x693   : > { %v1584_v21 = vpop.eup %1583 }
 0x694   : > { %v985_v3 = vmul.f32 0.0625, %v1584_v21  ;;  %v1039_v21 = vmul.f32 0.75, %v2490_v5 }
 0x696   : > { %v2534_v41 = vadd.f32 %v985_v3, %v2503_v56  ;;  %v1040_v3 = vmul.f32 0.75, %v2492_v24 }
 0x698   : > { %v997_v40 = vpack.c.bf16 %v2534_v41, %v2531_v37 }
 0x69a   : > { %1021 = vmatmul.bf16.gmra.mxu2 %v997_v40 }
 0x6ed   : > { %v1007_v18 = vpop.f32.mrf.mxu2 }
 0x6ee   : > { %v1008_v10 = vadd.f32 %v2412_v44, %v1007_v18 }
 0x6f0   : > { %1585 = vtanh.f32 %v1008_v10 }
 0x6f5   : > { %v1009_v42 = vpop.f32.mrf.mxu2 }
 0x6f6   : > { %v1586_v8 = vpop.eup %1585  ;;  %v1010_v12 = vadd.f32 %v2412_v44, %v1009_v42 }
 0x6f7   : > { %v1043_v9 = vmul.f32 0.0625, %v1586_v8 }
 0x6f8   : > { %1587 = vtanh.f32 %v1010_v12 }
 0x6f9   : > { %v1051_v32 = vadd.f32 %v1043_v9, %v986_v34 }
 0x6fb   : > { %v1059_v48 = vmul.f32 0.25, %v1051_v32 }
 0x6fd   : > { %v1012_v33 = vpop.f32.mrf.mxu2  ;;  %v2543_v13 = vadd.f32 %v1059_v48, %v1035_v54  ;;  %v1042_v48 = vmul.f32 0.75, %v2503_v56 }
 0x6fe   : > { %v1588_v38 = vpop.eup %1587  ;;  %v1013_v62 = vadd.f32 %v2412_v44, %v1012_v33 }
 0x6ff   : > { %v1044_v52 = vmul.f32 0.0625, %v1588_v38 }
 0x700   : > { %1589 = vtanh.f32 %v1013_v62 }
 0x701   : > { %v1052_v1 = vadd.f32 %v1044_v52, %v987_v59  ;;  %v1041_v52 = vmul.f32 0.75, %v2501_v46 }
 0x703   : > { %v1060_v26 = vmul.f32 0.25, %v1052_v1 }
 0x705   : > { %v2545_v61 = vadd.f32 %v1060_v26, %v1036_v43  ;;  %v1014_v23 = vpop.f32.mrf.mxu2 }
 0x706   : > { %v1590_v27 = vpop.eup %1589  ;;  %v1015_v35 = vadd.f32 %v2412_v44, %v1014_v23 }
 0x707   : > { %v1075_v34 = vpack.c.bf16 %v2545_v61, %v2543_v13  ;;  %v1045_v45 = vmul.f32 0.0625, %v1590_v27 }
 0x708   : > { %1591 = vtanh.f32 %v1015_v35 }
 0x709   : > { %1087 = vmatmul.bf16.vlgmr.msra.gmra.mxu3 %v1075_v34  ;;  %v1053_v59 = vadd.f32 %v1045_v45, %v988_v20  ;;  %v1116_v45 = vmul.f32 0.33333334, %v2466_v49 }
 0x70b   : > { %v1061_v47 = vmul.f32 0.25, %v1053_v59 }
 0x70d   : > { %v1017_v36 = vpop.f32.mrf.mxu2  ;;  %v2554_v29 = vadd.f32 %v1061_v47, %v1037_v16 }
 0x70e   : > { %v1592_v11 = vpop.eup %1591  ;;  %v1018_v22 = vadd.f32 %v2412_v44, %v1017_v36 }
 0x70f   : > { %v1046_v31 = vmul.f32 0.0625, %v1592_v11 }
 0x710   : > { %1593 = vtanh.f32 %v1018_v22 }
 0x711   : > { %v1054_v25 = vadd.f32 %v1046_v31, %v2516_v53 }
 0x713   : > { %v1062_v51 = vmul.f32 0.25, %v1054_v25 }
 0x715   : > { %v1019_v28 = vpop.f32.mrf.mxu2  ;;  %v2556_v7 = vadd.f32 %v1062_v51, %v1038_v2  ;;  %v1117_v51 = vmul.f32 0.33333334, %v2468_v58 }
 0x716   : > { %v1594_v20 = vpop.eup %1593  ;;  %v1020_v19 = vadd.f32 %v2412_v44, %v1019_v28 }
 0x717   : > { %v1076_v30 = vpack.c.bf16 %v2556_v7, %v2554_v29  ;;  %v1047_v14 = vmul.f32 0.0625, %v1594_v20 }
 0x718   : > { %1595 = vtanh.f32 %v1020_v19 }
 0x719   : > { %1092 = vmatmul.bf16.gmra.mxu3 %v1076_v30  ;;  %v1055_v53 = vadd.f32 %v1047_v14, %v2522_v60  ;;  %v1118_v30 = vmul.f32 0.33333334, %v2478_v57 }
 0x71b   : > { %v1063_v4 = vmul.f32 0.25, %v1055_v53 }
 0x71d   : > { %v1022_v17 = vpop.f32.mrf.mxu2  ;;  %v2566_v18 = vadd.f32 %v1063_v4, %v1039_v21 }
 0x71e   : > { %v1596_v63 = vpop.eup %1595  ;;  %v1023_v55 = vadd.f32 %v2412_v44, %v1022_v17 }
 0x71f   : > { %v1048_v0 = vmul.f32 0.0625, %v1596_v63 }
 0x720   : > { %1597 = vtanh.f32 %v1023_v55 }
 0x721   : > { %v1056_v50 = vadd.f32 %v1048_v0, %v2525_v39  ;;  %v1119_v0 = vmul.f32 0.33333334, %v2480_v6 }
 0x723   : > { %v1064_v15 = vmul.f32 0.25, %v1056_v50 }
 0x725   : > { %v1024_v40 = vpop.f32.mrf.mxu2  ;;  %v2568_v10 = vadd.f32 %v1064_v15, %v1040_v3 }
 0x726   : > { %v1598_v60 = vpop.eup %1597  ;;  %v1025_v42 = vadd.f32 %v2412_v44, %v1024_v40  ;;  %v1120_v40 = vmul.f32 0.33333334, %v2490_v5 }
 0x727   : > { %v1077_v8 = vpack.c.bf16 %v2568_v10, %v2566_v18  ;;  %v1049_v12 = vmul.f32 0.0625, %v1598_v60 }
 0x728   : > { %1599 = vtanh.f32 %v1025_v42 }
 0x729   : > { %1097 = vmatmul.bf16.gmra.mxu3 %v1077_v8  ;;  %v1057_v39 = vadd.f32 %v1049_v12, %v2531_v37 }
 0x72b   : > { %v1065_v33 = vmul.f32 0.25, %v1057_v39 }
 0x72d   : > { %v2577_v1 = vadd.f32 %v1065_v33, %v1041_v52 }
 0x72e   : > { %v1600_v9 = vpop.eup %1599 }
 0x72f   : > { %v1050_v32 = vmul.f32 0.0625, %v1600_v9  ;;  %v1121_v9 = vmul.f32 0.33333334, %v2492_v24 }
 0x731   : > { %v1058_v38 = vadd.f32 %v1050_v32, %v2534_v41 }
 0x733   : > { %v1066_v62 = vmul.f32 0.25, %v1058_v38 }
 0x735   : > { %v2579_v54 = vadd.f32 %v1066_v62, %v1042_v48 }
 0x737   : > { %v1078_v43 = vpack.c.bf16 %v2579_v54, %v2577_v1 }
 0x739   : > { %1102 = vmatmul.bf16.gmra.mxu3 %v1078_v43 }
 0x78c   : > { %v1088_v26 = vpop.f32.mrf.mxu3 }
 0x78d   : > { %v1089_v37 = vadd.f32 %v2412_v44, %v1088_v26 }
 0x78f   : > { %1601 = vtanh.f32 %v1089_v37 }
 0x794   : > { %v1090_v23 = vpop.f32.mrf.mxu3 }
 0x795   : > { %v1602_v41 = vpop.eup %1601  ;;  %v1091_v27 = vadd.f32 %v2412_v44, %v1090_v23 }
 0x796   : > { %v1124_v35 = vmul.f32 0.0625, %v1602_v41 }
 0x797   : > { %1603 = vtanh.f32 %v1091_v27 }
 0x798   : > { %v1132_v34 = vadd.f32 %v1124_v35, %v2543_v13 }
 0x79a   : > { %v1140_v59 = vmul.f32 0.6666667, %v1132_v34 }
 0x79c   : > { %v1148_v36 = vadd.f32 %v1140_v59, %v1116_v45  ;;  %v1093_v11 = vpop.f32.mrf.mxu3 }
 0x79d   : > { %v1604_v22 = vpop.eup %1603  ;;  %v1094_v31 = vadd.f32 %v2412_v44, %v1093_v11 }
 0x79e   : > { %1156 = vst [vmem:[#allocation2 + $0x30] sm:$0xff] %v1148_v36  ;;  %v1125_v47 = vmul.f32 0.0625, %v1604_v22 }
 0x79f   : > { %1164 = vst [vmem:[%s1978_s28] sm:$0xff] %v1148_v36  ;;  %1605 = vtanh.f32 %v1094_v31 }
 0x7a0   : > { %v1133_v25 = vadd.f32 %v1125_v47, %v2545_v61 }
 0x7a2   : > { %v1141_v16 = vmul.f32 0.6666667, %v1133_v25 }
 0x7a4   : > { %v1149_v2 = vadd.f32 %v1141_v16, %v1117_v51  ;;  %v1095_v13 = vpop.f32.mrf.mxu3 }
 0x7a5   : > { %v1606_v49 = vpop.eup %1605  ;;  %v1096_v28 = vadd.f32 %v2412_v44, %v1095_v13 }
 0x7a6   : > { %1157 = vst [vmem:[#allocation2] sm:$0xff] %v1149_v2  ;;  %v1126_v20 = vmul.f32 0.0625, %v1606_v49 }
 0x7a7   : > { %1165 = vst [vmem:[%s1978_s28 + $0x8] sm:$0xff] %v1149_v2  ;;  %1607 = vtanh.f32 %v1096_v28 }
 0x7a8   : > { %v1134_v19 = vadd.f32 %v1126_v20, %v2554_v29 }
 0x7aa   : > { %v1142_v14 = vmul.f32 0.6666667, %v1134_v19 }
 0x7ac   : > { %v1150_v53 = vadd.f32 %v1142_v14, %v1118_v30  ;;  %v1098_v61 = vpop.f32.mrf.mxu3 }
 0x7ad   : > { %v1608_v58 = vpop.eup %1607  ;;  %v1099_v17 = vadd.f32 %v2412_v44, %v1098_v61 }
 0x7ae   : > { %1158 = vst [vmem:[#allocation2 + $0x18] sm:$0xff] %v1150_v53  ;;  %v1127_v63 = vmul.f32 0.0625, %v1608_v58 }
 0x7af   : > { %1166 = vst [vmem:[%s1978_s28 + $0x10] sm:$0xff] %v1150_v53  ;;  %1609 = vtanh.f32 %v1099_v17 }
 0x7b0   : > { %v1135_v55 = vadd.f32 %v1127_v63, %v2556_v7 }
 0x7b2   : > { %v1143_v4 = vmul.f32 0.6666667, %v1135_v55 }
 0x7b4   : > { %v1151_v50 = vadd.f32 %v1143_v4, %v1119_v0  ;;  %v1100_v29 = vpop.f32.mrf.mxu3 }
 0x7b5   : > { %v1610_v57 = vpop.eup %1609  ;;  %v1101_v15 = vadd.f32 %v2412_v44, %v1100_v29 }
 0x7b6   : > { %1159 = vst [vmem:[#allocation2 + $0x10] sm:$0xff] %v1151_v50  ;;  %v1128_v21 = vmul.f32 0.0625, %v1610_v57 }
 0x7b7   : > { %1167 = vst [vmem:[%s1978_s28 + $0x18] sm:$0xff] %v1151_v50  ;;  %1611 = vtanh.f32 %v1101_v15 }
 0x7b8   : > { %v1136_v3 = vadd.f32 %v1128_v21, %v2566_v18 }
 0x7ba   : > { %v1144_v60 = vmul.f32 0.6666667, %v1136_v3 }
 0x7bc   : > { %v1152_v7 = vadd.f32 %v1144_v60, %v1120_v40  ;;  %v1103_v6 = vpop.f32.mrf.mxu3 }
 0x7bd   : > { %v1612_v42 = vpop.eup %1611  ;;  %v1104_v8 = vadd.f32 %v2412_v44, %v1103_v6 }
 0x7be   : > { %1160 = vst [vmem:[#allocation2 + $0x8] sm:$0xff] %v1152_v7  ;;  %v1129_v12 = vmul.f32 0.0625, %v1612_v42 }
 0x7bf   : > { %1168 = vst [vmem:[%s1978_s28 + $0x20] sm:$0xff] %v1152_v7  ;;  %1613 = vtanh.f32 %v1104_v8 }
 0x7c0   : > { %v1137_v39 = vadd.f32 %v1129_v12, %v2568_v10  ;;  %v1122_v10 = vmul.f32 0.33333334, %v2501_v46  ;;  %v1123_v46 = vmul.f32 0.33333334, %v2503_v56 }
 0x7c2   : > { %v1145_v18 = vmul.f32 0.6666667, %v1137_v39 }
 0x7c4   : > { %v1153_v32 = vadd.f32 %v1145_v18, %v1121_v9  ;;  %v1105_v5 = vpop.f32.mrf.mxu3 }
 0x7c5   : > { %v1614_v33 = vpop.eup %1613  ;;  %v1106_v38 = vadd.f32 %v2412_v44, %v1105_v5 }
 0x7c6   : > { %1161 = vst [vmem:[#allocation2 + $0x20] sm:$0xff] %v1153_v32  ;;  %v1130_v62 = vmul.f32 0.0625, %v1614_v33 }
 0x7c7   : > { %1169 = vst [vmem:[%s1978_s28 + $0x28] sm:$0xff] %v1153_v32  ;;  %1615 = vtanh.f32 %v1106_v38 }
 0x7c8   : > { %v1138_v52 = vadd.f32 %v1130_v62, %v2577_v1 }
 0x7ca   : > { %v1146_v24 = vmul.f32 0.6666667, %v1138_v52 }
 0x7cc   : > { %v1154_v48 = vadd.f32 %v1146_v24, %v1122_v10 }
 0x7cd   : > { %v1616_v43 = vpop.eup %1615 }
 0x7ce   : > { %1162 = vst [vmem:[#allocation2 + $0x28] sm:$0xff] %v1154_v48  ;;  %v1131_v44 = vmul.f32 0.0625, %v1616_v43 }
 0x7cf   : > { %1170 = vst [vmem:[%s1978_s28 + $0x30] sm:$0xff] %v1154_v48 }
 0x7d0   : > { %v1139_v26 = vadd.f32 %v1131_v44, %v2579_v54 }
 0x7d2   : > { %v1147_v1 = vmul.f32 0.6666667, %v1139_v26 }
 0x7d4   : > { %v1155_v37 = vadd.f32 %v1147_v1, %v1123_v46 }
 0x7d6   : > { %1163 = vst [vmem:[#allocation2 + $0x38] sm:$0xff] %v1155_v37 }
 0x7d7   : > { %1171 = vst [vmem:[%s1978_s28 + $0x38] sm:$0xff] %v1155_v37 }
 0x7d8   : > { %1705 = shalt.err (!%p1702_p7)
}
 0x7d9   : > { %s1809_s3 = smov 128   ;;  %s1810_s28 = smov 8  }
 0x7da   : > { %1313 = dma.vmem_to_hbm [thread:$0]  (%p1901_p6), %s1188_s6, 1024, %s1190_s20, %s1173_s8, %s1809_s3, %s1809_s3, %s1810_s28  }
 0x7db PF: > { %s2703_s15 = sld [smem:[#allocation12_spill]]  ;;  %p1330_p8 = scmp.ge.s32.totalorder %s1804_s22, 2 }
 0x7dd   : > { %p1324_p9 = pnand %p1330_p8, %p1907_p10 }
 0x7df   : > { %p1325_p12 = pneg %p1324_p9 }
 0x7e1   : > { %s1204_s30 = sand.u32 1, %s2703_s15  }
 0x7e2   : > { %s1205_s4 = scalar_lea.sflag [#allocation5], %s1204_s30 }
 0x7e3   : > { %1759 = dma.done.wait (%p1325_p12), %s1205_s4, 1024  }
 0x7e4   : > { %1761 = vsyncadd (%p1325_p12), %s1205_s4, 4294966272  ;;  %s20_s22 = sadd.s32 1, %s1804_s22   ;;  %s2705_s18 = sld [smem:[#allocation13_spill]] }
 0x7e5   : > { %p17_p13 = scmp.ge.s32.totalorder %s20_s22, 10   ;;  %s2706_s20 = sld [smem:[#allocation16_spill]] }
 0x7e6   : > { %s2707_s7 = sld [smem:[#allocation17_spill]]  ;;  %s2708_s12 = smov %s1768_s13 }
 0x7e7   : > { %s2709_s13 = smov %s1772_s14  ;;  %s2710_s14 = smov %s1952_s1 }
 0x7e8   : > { %s2711_s15 = smov %s1780_s16  ;;  %s2712_s16 = smov %s1784_s17 }
 0x7e9   : > { %s2713_s17 = smov %s1949_s9  ;;  %s2714_s19 = smov %s1800_s21 }
 0x7ea   :  { %19 = sbr.rel (!%p17_p13) target bundleno = 13 (0xd), region = 85 }
 0x7ec   : > { %s2715_s21 = smov %s2707_s7 }
 0x7ef   :  { %1211 = vsyncpa [#allocation4], 1 }
 0x7f0   :  { %1213 = vsyncpa [#allocation4 + $0x1], 1 }
 0x7f1   :  { %1214 = vsyncpa [#allocation7], 1 }
 0x7f2   :  { %1215 = vsyncpa [#allocation5], 1 }
 0x7f3   :  { %1217 = vsyncpa [#allocation5 + $0x1], 1 }

</bundles_post_ra>
